<compile_context>
chip_gen: v5e
topology: v5e:2x2
jax: 0.10.0
libtpu: 0.0.40
codegen_flags: <defaults>
</compile_context>

<pallas_src>
import functools
import math

import jax
import jax.numpy as jnp
import numpy as np
from jax import lax
from jax.experimental import pallas as pl
from jax.experimental.pallas import tpu as pltpu

_MASK_VALUE = -1e30   # finite "-inf": keeps the online softmax NaN-free on masked tiles
_LN_EPS = 1e-5


def _round_up(n, m):
    return ((n + m - 1) // m) * m


def _tpu_vmem_capacity_bytes():
    cap = 64 * 1024 * 1024                      # conservative fallback (v7x per-TC VMEM)
    try:
        info = pltpu.get_tpu_info()
        cap = int(getattr(info, "vmem_capacity_bytes", cap))
    except Exception:
        pass
    return cap


# --------------------------- kernel A: flash attention ---------------------------- #

def _flash_attn_kernel(q_ref, k_ref, v_ref, o_ref, m_scr, l_scr, acc_scr, *,
                       num_heads, window_size, global_tokens, seq_len,
                       num_key_blocks, n_glb, nb_w, windowed):
    """Local-window flash attention.  Q/K/V arrive pre-projected, head-major, bf16,
    Q pre-scaled by 1/sqrt(d_k).  Output is (tq, D) with heads concatenated on lanes."""
    tq = q_ref.shape[2]
    tk = k_ref.shape[2]
    qi = pl.program_id(1)
    ki = pl.program_id(2)

    @pl.when(ki == 0)
    def _init():
        m_scr[...] = jnp.full(m_scr.shape, _MASK_VALUE, jnp.float32)
        l_scr[...] = jnp.zeros(l_scr.shape, jnp.float32)
        acc_scr[...] = jnp.zeros(acc_scr.shape, jnp.float32)

    def step(kb):
        q = q_ref[0]                                  # (H, tq, d_k) bf16, pre-scaled
        k = k_ref[0]                                  # (H, tk, d_k)
        v = v_ref[0]
        # Heads batched in one einsum (head = batch dim) -> MXU streams heads back-to-back.
        s = jnp.einsum("hqd,hkd->hqk", q, k,
                       preferred_element_type=jnp.float32)       # (H, tq, tk) f32

        # Local-window mask generated in-kernel from iota, shared by all heads.
        q_pos = qi * tq + lax.broadcasted_iota(jnp.int32, (tq, tk), 0)
        k_pos = kb * tk + lax.broadcasted_iota(jnp.int32, (tq, tk), 1)
        masked = jnp.abs(q_pos - k_pos) > window_size
        if global_tokens > 0:
            masked = masked & (q_pos >= global_tokens) & (k_pos >= global_tokens)
        masked = masked | (k_pos >= seq_len)          # mask padded key rows
        masked = masked[None]                         # (1, tq, tk) -> broadcast over heads
        s = jnp.where(masked, _MASK_VALUE, s)

        m_prev = m_scr[...]                                        # (H, tq, 1)
        m_new = jnp.maximum(m_prev, jnp.max(s, axis=-1, keepdims=True))
        alpha = jnp.exp(m_prev - m_new)
        # Gate masked entries to exactly 0 (robust even while a row is fully masked).
        p = jnp.where(masked, 0.0, jnp.exp(s - m_new))
        l_scr[...] = alpha * l_scr[...] + jnp.sum(p, axis=-1, keepdims=True)
        pv = jnp.einsum("hqk,hkd->hqd", p.astype(v.dtype), v,
                        preferred_element_type=jnp.float32)       # (H, tq, d_k)
        acc_scr[...] = alpha * acc_scr[...] + pv
        m_scr[...] = m_new

    if windowed:
        # Leading n_glb steps always visit the global key blocks; remaining steps walk the
        # window around qi, skipping blocks already covered by the global steps.
        is_glb = ki < n_glb
        win_kb = qi + (ki - n_glb) - nb_w
        kb = jnp.where(is_glb, ki, win_kb)
        valid = jnp.logical_or(
            is_glb, jnp.logical_and(win_kb >= n_glb, win_kb < num_key_blocks))

        @pl.when(valid)
        def _():
            step(kb)
    else:
        step(ki)

    @pl.when(ki == pl.num_programs(2) - 1)
    def _finalize():
        l = l_scr[...]
        l = jnp.where(l == 0.0, 1.0, l)               # guard fully-masked (padded) rows
        inv_l = pl.reciprocal(l, approx=True)
        o = acc_scr[...] * inv_l                      # (H, tq, d_k) f32
        o_ref[0] = jnp.concatenate(
            [o[h] for h in range(num_heads)], axis=-1).astype(o_ref.dtype)


# -------------------- kernel B: O-proj + residual + LN + FFN ---------------------- #

def _oproj_ln_ffn_kernel(x_ref, a_ref, wo_ref, bo_ref, g_ref, be_ref,
                         w1_ref, b1_ref, w2_ref, b2_ref, out_ref,
                         x1_scr, n_scr, acc_scr, *, compute_dtype):
    """Per (batch, q-tile): out = x1 + FFN(LN(x1)), x1 = x + attn @ Wo + bo.
    d_ff is a grid reduction axis (fi): W1/W2 chunks stream, FFN accumulates in VMEM."""
    fi = pl.program_id(2)

    @pl.when(fi == 0)
    def _init():
        sa = jnp.dot(a_ref[0], wo_ref[...],
                     preferred_element_type=jnp.float32) + bo_ref[...]
        x1 = x_ref[0] + sa                                            # residual #1 (f32)
        x1_scr[...] = x1
        # LayerNorm (PyTorch semantics: biased variance, eps=1e-5).
        mu = jnp.mean(x1, axis=-1, keepdims=True)
        var = jnp.mean((x1 - mu) ** 2, axis=-1, keepdims=True)
        n = (x1 - mu) * lax.rsqrt(var + _LN_EPS) * g_ref[...] + be_ref[...]
        n_scr[...] = n.astype(compute_dtype)
        acc_scr[...] = jnp.zeros_like(acc_scr)

    # One d_ff chunk of Linear -> ReLU -> Linear, accumulated into VMEM scratch.
    h1 = jnp.dot(n_scr[...], w1_ref[...],
                 preferred_element_type=jnp.float32) + b1_ref[...]
    h1 = jnp.maximum(h1, 0.0).astype(compute_dtype)
    acc_scr[...] += jnp.dot(h1, w2_ref[...], preferred_element_type=jnp.float32)

    @pl.when(fi == pl.num_programs(2) - 1)
    def _finalize():
        out_ref[0] = (x1_scr[...] + acc_scr[...] + b2_ref[...]).astype(out_ref.dtype)


# ------------------------------------ wrapper -------------------------------------- #

def encoder_block(x, params, *, num_heads, window_size, global_tokens=0,
                  seq_tile=None, ff_chunk=512, compute_dtype=jnp.bfloat16,
                  interpret=False):
    """EncoderBlock forward.  x: (B, S, d_model).  Weights stored as (in, out)."""
    B, S, D = x.shape
    H = num_heads
    assert D % H == 0
    d_k = D // H
    d_ff = params["w1"].shape[1]
    cdt = compute_dtype
    f32 = jnp.float32
    scale = 1.0 / math.sqrt(d_k)

    vmem_cap = _tpu_vmem_capacity_bytes()
    # Headroom for compiler scratch: ~3/4 of physical VMEM (48 MiB v7x, 96 MiB v5e/v6e).
    vmem_limit = max(32 * 1024 * 1024, min((vmem_cap * 3) // 4, 100 * 1024 * 1024))

    if seq_tile is None:
        seq_tile = 512 if vmem_cap >= (100 * 1024 * 1024) else 256
    seq_tile = max(8, min(_round_up(seq_tile, 8), _round_up(S, 8)))
    s_pad = _round_up(S, seq_tile)
    n_blk = s_pad // seq_tile
    nb_w = -(-window_size // seq_tile)                      # key-block halo per q block
    n_glb = -(-global_tokens // seq_tile) if global_tokens > 0 else 0

    windowed = (n_glb + 2 * nb_w + 1) < n_blk               # pruned path actually prunes
    n_kv = (n_glb + 2 * nb_w + 1) if windowed else n_blk

    xp = x if s_pad == S else jnp.pad(x, ((0, 0), (0, s_pad - S), (0, 0)))

    # ---- Q/K/V projections hoisted out of the attention loop: one GEMM per token,
    # bf16 operands, f32 accumulation (matches reference mixed-precision policy).
    def proj(w, b):
        return jnp.dot(xp.astype(cdt), w.astype(cdt),
                       preferred_element_type=jnp.float32) + b.astype(f32)

    def to_heads(t):
        return t.reshape(B, s_pad, H, d_k).transpose(0, 2, 1, 3).astype(cdt)

    qh = to_heads(proj(params["wq"], params["bq"]) * scale)  # (B, H, s_pad, d_k), scaled
    kh = to_heads(proj(params["wk"], params["bk"]))
    vh = to_heads(proj(params["wv"], params["bv"]))

    # -------------------------------- attention call -------------------------------- #
    attn_kernel = functools.partial(
        _flash_attn_kernel, num_heads=H, window_size=window_size,
        global_tokens=global_tokens, seq_len=S, num_key_blocks=n_blk,
        n_glb=n_glb, nb_w=nb_w, windowed=windowed)

    def q_map(b, qi, ki):
        return (b, 0, qi, 0)

    if windowed:
        def kv_map(b, qi, ki):
            win_kb = qi + (ki - n_glb) - nb_w
            kb = jnp.where(ki < n_glb, ki, jnp.clip(win_kb, 0, n_blk - 1))
            return (b, 0, kb, 0)
    else:
        def kv_map(b, qi, ki):
            return (b, 0, ki, 0)

    flops_a = int(4 * B * n_blk * n_kv * seq_tile * seq_tile * D)
    transc_a = int(B * n_blk * n_kv * H * seq_tile * seq_tile)
    bytes_a = int(2 * B * s_pad * D                                 # Q (bf16)
                  + 2 * 2 * B * n_blk * n_kv * seq_tile * D         # K, V revisited
                  + 2 * B * s_pad * D)                               # output (bf16)

    attn = pl.pallas_call(
        attn_kernel,
        out_shape=jax.ShapeDtypeStruct((B, s_pad, D), cdt),
        grid=(B, n_blk, n_kv),
        in_specs=[
            pl.BlockSpec((1, H, seq_tile, d_k), q_map),
            pl.BlockSpec((1, H, seq_tile, d_k), kv_map),
            pl.BlockSpec((1, H, seq_tile, d_k), kv_map),
        ],
        out_specs=pl.BlockSpec((1, seq_tile, D), lambda b, qi, ki: (b, qi, 0)),
        scratch_shapes=[
            pltpu.VMEM((H, seq_tile, 1), jnp.float32),    # running max
            pltpu.VMEM((H, seq_tile, 1), jnp.float32),    # running sum
            pltpu.VMEM((H, seq_tile, d_k), jnp.float32),  # output accumulator
        ],
        compiler_params=pltpu.CompilerParams(
            dimension_semantics=("parallel", "parallel", "arbitrary"),
            vmem_limit_bytes=vmem_limit),
        cost_estimate=pl.CostEstimate(flops=flops_a, transcendentals=transc_a,
                                      bytes_accessed=bytes_a),
        interpret=interpret,
    )(qh, kh, vh)

    # Global query rows (< global_tokens) attend to ALL keys; under the pruned window
    # path they only visited global + window key blocks, so recompute those few rows
    # densely in XLA (O(G*S*D)) and patch them into the attention output.
    if windowed and global_tokens > 0:
        G = global_tokens
        sg = jnp.einsum("bhgd,bhsd->bhgs", qh[:, :, :G, :], kh,
                        preferred_element_type=jnp.float32)
        pad_cols = jnp.arange(s_pad) >= S
        sg = jnp.where(pad_cols[None, None, None, :], -jnp.inf, sg)
        pg = jax.nn.softmax(sg, axis=-1)
        og = jnp.einsum("bhgs,bhsd->bhgd", pg.astype(cdt), vh,
                        preferred_element_type=jnp.float32)
        og = og.transpose(0, 2, 1, 3).reshape(B, G, D).astype(attn.dtype)
        attn = attn.at[:, :G, :].set(og)

    # ---------------------- O-proj + residual + LN + FFN call ----------------------- #
    d_ff_pad = _round_up(d_ff, 128)
    ff_tile = max(128, min(_round_up(min(ff_chunk, d_ff_pad), 128), d_ff_pad))
    d_ff_pad = _round_up(d_ff_pad, ff_tile)
    n_ff = d_ff_pad // ff_tile

    w1 = params["w1"].astype(cdt)
    b1 = params["b1"].astype(f32)
    w2 = params["w2"].astype(cdt)
    if d_ff_pad != d_ff:
        w1 = jnp.pad(w1, ((0, 0), (0, d_ff_pad - d_ff)))
        b1 = jnp.pad(b1, ((0, 0), (0, d_ff_pad - d_ff)))
        w2 = jnp.pad(w2, ((0, d_ff_pad - d_ff), (0, 0)))
    wo = params["wo"].astype(cdt)
    bo = params["bo"].astype(f32)
    b2 = params["b2"].astype(f32)
    ln_g = params["ln_g"].astype(f32)
    ln_b = params["ln_b"].astype(f32)

    ffn_kernel = functools.partial(_oproj_ln_ffn_kernel, compute_dtype=cdt)

    def tok_map(b, qi, fi):
        return (b, qi, 0)

    def const2(b, qi, fi):
        return (0, 0)

    flops_b = int(B * s_pad * (2 * D * D + 4 * D * d_ff_pad))
    bytes_b = int(B * s_pad * D * (4 + 2 + 4)
                  + 2 * D * D
                  + 2 * B * n_blk * (2 * D * d_ff_pad))

    out = pl.pallas_call(
        ffn_kernel,
        out_shape=jax.ShapeDtypeStruct((B, s_pad, D), x.dtype),
        grid=(B, n_blk, n_ff),
        in_specs=[
            pl.BlockSpec((1, seq_tile, D), tok_map),                  # x (residual, f32)
            pl.BlockSpec((1, seq_tile, D), tok_map),                  # attention heads
            pl.BlockSpec((D, D), const2),                             # Wo
            pl.BlockSpec((1, D), const2),                             # bo
            pl.BlockSpec((1, D), const2),                             # LN gamma
            pl.BlockSpec((1, D), const2),                             # LN beta
            pl.BlockSpec((D, ff_tile), lambda b, qi, fi: (0, fi)),    # W1 chunk (streamed)
            pl.BlockSpec((1, ff_tile), lambda b, qi, fi: (0, fi)),    # b1 chunk
            pl.BlockSpec((ff_tile, D), lambda b, qi, fi: (fi, 0)),    # W2 chunk (streamed)
            pl.BlockSpec((1, D), const2),                             # b2
        ],
        out_specs=pl.BlockSpec((1, seq_tile, D), tok_map),
        scratch_shapes=[
            pltpu.VMEM((seq_tile, D), jnp.float32),   # x1 (residual #1)
            pltpu.VMEM((seq_tile, D), cdt),           # LN(x1)
            pltpu.VMEM((seq_tile, D), jnp.float32),   # FFN accumulator
        ],
        compiler_params=pltpu.CompilerParams(
            dimension_semantics=("parallel", "parallel", "arbitrary"),
            vmem_limit_bytes=vmem_limit),
        cost_estimate=pl.CostEstimate(flops=flops_b, transcendentals=0,
                                      bytes_accessed=bytes_b),
        interpret=interpret,
    )(xp, attn, wo, bo, ln_g, ln_b, w1, b1, w2, b2)

    # TODO(synk): use_cache / past_key_value (KV concat + returning next_kv) and the
    # optional src_mask input are not implemented; default forward path is covered.
    return out if s_pad == S else out[:, :S, :]


# ------------------------------ pure-JAX reference --------------------------------- #

def encoder_block_ref(x, params, *, num_heads, window_size, global_tokens=0,
                      compute_dtype=jnp.bfloat16):
    """PyTorch EncoderBlock semantics.  Matmul operands cast to compute_dtype with f32
    accumulation to mirror the kernel's mixed-precision MXU policy."""
    B, S, D = x.shape
    d_k = D // num_heads
    cdt = compute_dtype

    def mm(a, w):
        return jnp.dot(a.astype(cdt), w.astype(cdt),
                       preferred_element_type=jnp.float32)

    i = jnp.arange(S)[:, None]
    j = jnp.arange(S)[None, :]
    masked = (jnp.abs(i - j) > window_size) & (i >= global_tokens) & (j >= global_tokens)
    mask = jnp.where(masked, -jnp.inf, 0.0).astype(jnp.float32)

    q = mm(x, params["wq"]) + params["bq"]
    k = mm(x, params["wk"]) + params["bk"]
    v = mm(x, params["wv"]) + params["bv"]

    def split(t):
        return t.reshape(B, S, num_heads, d_k).transpose(0, 2, 1, 3)

    Q = split(q * (1.0 / math.sqrt(d_k))).astype(cdt)
    K = split(k).astype(cdt)
    V = split(v).astype(cdt)
    s = jnp.einsum("bhsd,bhtd->bhst", Q, K,
                   preferred_element_type=jnp.float32) + mask[None, None]
    p = jax.nn.softmax(s, axis=-1)
    a = jnp.einsum("bhst,bhtd->bhsd", p.astype(cdt), V,
                   preferred_element_type=jnp.float32)
    a = a.transpose(0, 2, 1, 3).reshape(B, S, D)
    sa = mm(a, params["wo"]) + params["bo"]
    x1 = x + sa

    mu = x1.mean(-1, keepdims=True)
    var = ((x1 - mu) ** 2).mean(-1, keepdims=True)
    n = (x1 - mu) / jnp.sqrt(var + _LN_EPS) * params["ln_g"] + params["ln_b"]
    h1 = jnp.maximum(mm(n, params["w1"]) + params["b1"], 0.0)
    ff = mm(h1, params["w2"]) + params["b2"]
    return x1 + ff


# -------------------------------------- main --------------------------------------- #

def _make_params(key, D, d_ff):
    ks = jax.random.split(key, 14)

    def lin(kw, kb, fan_in, fan_out):
        bound = 1.0 / math.sqrt(fan_in)
        w = jax.random.uniform(kw, (fan_in, fan_out), jnp.float32, -bound, bound)
        b = jax.random.uniform(kb, (1, fan_out), jnp.float32, -bound, bound)
        return w, b

    wq, bq = lin(ks[0], ks[1], D, D)
    wk, bk = lin(ks[2], ks[3], D, D)
    wv, bv = lin(ks[4], ks[5], D, D)
    wo, bo = lin(ks[6], ks[7], D, D)
    w1, b1 = lin(ks[8], ks[9], D, d_ff)
    w2, b2 = lin(ks[10], ks[11], d_ff, D)
    ln_g = 1.0 + 0.1 * jax.random.normal(ks[12], (1, D), jnp.float32)
    ln_b = 0.1 * jax.random.normal(ks[13], (1, D), jnp.float32)
    return dict(wq=wq, bq=bq, wk=wk, bk=bk, wv=wv, bv=bv, wo=wo, bo=bo,
                ln_g=ln_g, ln_b=ln_b, w1=w1, b1=b1, w2=w2, b2=b2)


if __name__ == "__main__":
    root = jax.random.PRNGKey(0)
    cases = [
        # (B, S, d_model, heads, d_ff, window, global_tokens, seq_tile, ff_chunk)
        (2, 64, 128, 4, 256, 4, 0, 16, 128),  # pruned-window flash path, streamed FFN
        (1, 24, 64, 2, 128, 3, 2, 16, 128),   # seq padding + global tokens -> dense path
        (1, 96, 64, 2, 128, 3, 2, 16, 128),   # pruned-window path WITH global tokens
    ]
    for idx, (B, S, D, H, Fd, W, G, T, FC) in enumerate(cases):
        key = jax.random.fold_in(root, idx)
        kp, kx = jax.random.split(key)
        params = _make_params(kp, D, Fd)
        x = jax.random.normal(kx, (B, S, D), jnp.float32)

        out = encoder_block(x, params, num_heads=H, window_size=W,
                            global_tokens=G, seq_tile=T, ff_chunk=FC)
        out = jax.block_until_ready(out)

        ref = encoder_block_ref(x, params, num_heads=H, window_size=W,
                                global_tokens=G, compute_dtype=jnp.bfloat16)
        np.testing.assert_allclose(np.asarray(out), np.asarray(ref),
                                   atol=2e-2, rtol=2e-2)

    print("KERNEL_OK")
</pallas_src>

<mosaic_0001>
module attributes {stable_mosaic.version = 11 : i64} {
  func.func @_flash_attn_kernel(%arg0: i32, %arg1: i32, %arg2: i32, %arg3: memref<1x4x16x32xbf16, #tpu.memory_space<vmem>>, %arg4: memref<1x4x16x32xbf16, #tpu.memory_space<vmem>>, %arg5: memref<1x4x16x32xbf16, #tpu.memory_space<vmem>>, %arg6: memref<1x16x128xbf16, #tpu.memory_space<vmem>>, %arg7: memref<4x16x1xf32, #tpu.memory_space<vmem>>, %arg8: memref<4x16x1xf32, #tpu.memory_space<vmem>>, %arg9: memref<4x16x32xf32, #tpu.memory_space<vmem>>) attributes {dimension_semantics = [#tpu.dimension_semantics<parallel>, #tpu.dimension_semantics<parallel>, #tpu.dimension_semantics<arbitrary>], iteration_bounds = array<i64: 2, 4, 3>, scalar_prefetch = 0 : i64, scratch_operands = 3 : i64, tpu.core_type = #tpu.core_type<tc>, window_params = [{transform_indices = @transform_0, window_bounds = array<i64: 1, 4, 16, 32>}, {transform_indices = @transform_1, window_bounds = array<i64: 1, 4, 16, 32>}, {transform_indices = @transform_2, window_bounds = array<i64: 1, 4, 16, 32>}, {transform_indices = @transform_3, window_bounds = array<i64: 1, 16, 128>}]} {
    %c0_i32 = arith.constant 0 : i32
    %0 = arith.cmpi eq, %arg2, %c0_i32 : i32
    %1 = arith.extui %0 : i1 to i32
    %c0_i32_0 = arith.constant 0 : i32
    %2 = arith.cmpi ne, %1, %c0_i32_0 : i32
    scf.if %2 {
      %cst = arith.constant -1.000000e+30 : f32
      %17 = vector.broadcast %cst : f32 to vector<4x16x1xf32>
      %c0 = arith.constant 0 : index
      %c0_6 = arith.constant 0 : index
      %c0_7 = arith.constant 0 : index
      %18 = vector.load %arg7[%c0, %c0_6, %c0_7] : memref<4x16x1xf32, #tpu.memory_space<vmem>>, vector<4x16x1xf32>
      tpu.vector_store %arg7[%c0, %c0_6, %c0_7], %17 {strides = array<i32>} : memref<4x16x1xf32, #tpu.memory_space<vmem>>, vector<4x16x1xf32>,
      %cst_8 = arith.constant 0.000000e+00 : f32
      %19 = vector.broadcast %cst_8 : f32 to vector<4x16x1xf32>
      %c0_9 = arith.constant 0 : index
      %c0_10 = arith.constant 0 : index
      %c0_11 = arith.constant 0 : index
      %20 = vector.load %arg8[%c0_9, %c0_10, %c0_11] : memref<4x16x1xf32, #tpu.memory_space<vmem>>, vector<4x16x1xf32>
      tpu.vector_store %arg8[%c0_9, %c0_10, %c0_11], %19 {strides = array<i32>} : memref<4x16x1xf32, #tpu.memory_space<vmem>>, vector<4x16x1xf32>,
      %cst_12 = arith.constant 0.000000e+00 : f32
      %21 = vector.broadcast %cst_12 : f32 to vector<4x16x32xf32>
      %c0_13 = arith.constant 0 : index
      %c0_14 = arith.constant 0 : index
      %c0_15 = arith.constant 0 : index
      %22 = vector.load %arg9[%c0_13, %c0_14, %c0_15] : memref<4x16x32xf32, #tpu.memory_space<vmem>>, vector<4x16x32xf32>
      tpu.vector_store %arg9[%c0_13, %c0_14, %c0_15], %21 {strides = array<i32>} : memref<4x16x32xf32, #tpu.memory_space<vmem>>, vector<4x16x32xf32>,
    } else {
    }
    %c0_i32_1 = arith.constant 0 : i32
    %3 = arith.cmpi slt, %arg2, %c0_i32_1 : i32
    %c0_i32_2 = arith.constant 0 : i32
    %4 = arith.subi %arg2, %c0_i32_2 : i32
    %5 = arith.addi %arg1, %4 : i32
    %c1_i32 = arith.constant 1 : i32
    %6 = arith.subi %5, %c1_i32 : i32
    %7 = arith.select %3, %arg2, %6 : i32
    %c0_i32_3 = arith.constant 0 : i32
    %8 = arith.cmpi sge, %6, %c0_i32_3 : i32
    %c4_i32 = arith.constant 4 : i32
    %9 = arith.cmpi slt, %6, %c4_i32 : i32
    %10 = arith.andi %8, %9 : i1
    %11 = arith.ori %3, %10 : i1
    %12 = arith.extui %11 : i1 to i32
    %c0_i32_4 = arith.constant 0 : i32
    %13 = arith.cmpi ne, %12, %c0_i32_4 : i32
    scf.if %13 {
      %c0 = arith.constant 0 : index
      %c0_6 = arith.constant 0 : index
      %c0_7 = arith.constant 0 : index
      %c0_8 = arith.constant 0 : index
      %17 = vector.load %arg3[%c0, %c0_6, %c0_7, %c0_8] : memref<1x4x16x32xbf16, #tpu.memory_space<vmem>>, vector<1x4x16x32xbf16>
      %18 = vector.shape_cast %17 : vector<1x4x16x32xbf16> to vector<4x16x32xbf16>
      %c0_9 = arith.constant 0 : index
      %c0_10 = arith.constant 0 : index
      %c0_11 = arith.constant 0 : index
      %c0_12 = arith.constant 0 : index
      %19 = vector.load %arg4[%c0_9, %c0_10, %c0_11, %c0_12] : memref<1x4x16x32xbf16, #tpu.memory_space<vmem>>, vector<1x4x16x32xbf16>
      %20 = vector.shape_cast %19 : vector<1x4x16x32xbf16> to vector<4x16x32xbf16>
      %c0_13 = arith.constant 0 : index
      %c0_14 = arith.constant 0 : index
      %c0_15 = arith.constant 0 : index
      %c0_16 = arith.constant 0 : index
      %21 = vector.load %arg5[%c0_13, %c0_14, %c0_15, %c0_16] : memref<1x4x16x32xbf16, #tpu.memory_space<vmem>>, vector<1x4x16x32xbf16>
      %22 = vector.shape_cast %21 : vector<1x4x16x32xbf16> to vector<4x16x32xbf16>
      "tpu.trace_start"() <{level = 10 : i32, message = "hqd,hkd->hqk"}> : () -> ()
      %cst = arith.constant dense<0.000000e+00> : vector<4x16x16xf32>
      %23 = tpu.matmul %18, %20, %cst {dimension_numbers = #tpu.dot_dimension_numbers<[2], [2], [1], [1], [0, 0, 0, 1, 1, 1], [0], [0]>} : vector<4x16x32xbf16>, vector<4x16x32xbf16>, vector<4x16x16xf32> -> vector<4x16x16xf32>
      "tpu.trace_stop"() : () -> ()
      %c16_i32 = arith.constant 16 : i32
      %24 = arith.muli %arg1, %c16_i32 : i32
      %25 = tpu.iota {dimensions = array<i32: 0>} : vector<16x16xi32>
      %26 = vector.broadcast %24 : i32 to vector<16x16xi32>
      %27 = arith.addi %26, %25 : vector<16x16xi32>
      %c16_i32_17 = arith.constant 16 : i32
      %28 = arith.muli %7, %c16_i32_17 : i32
      %29 = tpu.iota {dimensions = array<i32: 1>} : vector<16x16xi32>
      %30 = vector.broadcast %28 : i32 to vector<16x16xi32>
      %31 = arith.addi %30, %29 : vector<16x16xi32>
      %32 = arith.subi %27, %31 : vector<16x16xi32>
      %33 = math.absi %32 : vector<16x16xi32>
      %c4_i32_18 = arith.constant 4 : i32
      %34 = vector.broadcast %c4_i32_18 : i32 to vector<16x16xi32>
      %35 = arith.cmpi sgt, %33, %34 : vector<16x16xi32>
      %c64_i32 = arith.constant 64 : i32
      %36 = vector.broadcast %c64_i32 : i32 to vector<16x16xi32>
      %37 = arith.cmpi sge, %31, %36 : vector<16x16xi32>
      %38 = arith.ori %35, %37 : vector<16x16xi1>
      %39 = vector.shape_cast %38 : vector<16x16xi1> to vector<1x16x16xi1>
      %cst_19 = arith.constant -1.000000e+30 : f32
      %40 = vector.shape_cast %39 : vector<1x16x16xi1> to vector<1x16x16xi1>
      %41 = vector.broadcast %40 : vector<1x16x16xi1> to vector<4x16x16xi1>
      %42 = vector.broadcast %cst_19 : f32 to vector<4x16x16xf32>
      %43 = arith.select %41, %42, %23 : vector<4x16x16xi1>, vector<4x16x16xf32>
      %c0_20 = arith.constant 0 : index
      %c0_21 = arith.constant 0 : index
      %c0_22 = arith.constant 0 : index
      %44 = vector.load %arg7[%c0_20, %c0_21, %c0_22] : memref<4x16x1xf32, #tpu.memory_space<vmem>>, vector<4x16x1xf32>
      %cst_23 = arith.constant dense<0xFF800000> : vector<4x16xf32>
      %45 = vector.multi_reduction <maximumf>, %43, %cst_23 [2] : vector<4x16x16xf32> to vector<4x16xf32>
      %46 = vector.shape_cast %45 : vector<4x16xf32> to vector<4x16x1xf32>
      %47 = arith.maximumf %44, %46 : vector<4x16x1xf32>
      %48 = arith.subf %44, %47 : vector<4x16x1xf32>
      %49 = math.exp %48 : vector<4x16x1xf32>
      %50 = vector.broadcast %47 : vector<4x16x1xf32> to vector<4x16x16xf32>
      %51 = arith.subf %43, %50 : vector<4x16x16xf32>
      %52 = math.exp %51 : vector<4x16x16xf32>
      %cst_24 = arith.constant 0.000000e+00 : f32
      %53 = vector.shape_cast %39 : vector<1x16x16xi1> to vector<1x16x16xi1>
      %54 = vector.broadcast %53 : vector<1x16x16xi1> to vector<4x16x16xi1>
      %55 = vector.broadcast %cst_24 : f32 to vector<4x16x16xf32>
      %56 = arith.select %54, %55, %52 : vector<4x16x16xi1>, vector<4x16x16xf32>
      %c0_25 = arith.constant 0 : index
      %c0_26 = arith.constant 0 : index
      %c0_27 = arith.constant 0 : index
      %57 = vector.load %arg8[%c0_25, %c0_26, %c0_27] : memref<4x16x1xf32, #tpu.memory_space<vmem>>, vector<4x16x1xf32>
      %58 = arith.mulf %49, %57 : vector<4x16x1xf32>
      %cst_28 = arith.constant dense<0.000000e+00> : vector<4x16xf32>
      %59 = vector.multi_reduction <add>, %56, %cst_28 [2] : vector<4x16x16xf32> to vector<4x16xf32>
      %60 = vector.shape_cast %59 : vector<4x16xf32> to vector<4x16x1xf32>
      %61 = arith.addf %58, %60 : vector<4x16x1xf32>
      %c0_29 = arith.constant 0 : index
      %c0_30 = arith.constant 0 : index
      %c0_31 = arith.constant 0 : index
      %62 = vector.load %arg8[%c0_29, %c0_30, %c0_31] : memref<4x16x1xf32, #tpu.memory_space<vmem>>, vector<4x16x1xf32>
      tpu.vector_store %arg8[%c0_29, %c0_30, %c0_31], %61 {strides = array<i32>} : memref<4x16x1xf32, #tpu.memory_space<vmem>>, vector<4x16x1xf32>,
      %63 = arith.truncf %56 : vector<4x16x16xf32> to vector<4x16x16xbf16>
      "tpu.trace_start"() <{level = 10 : i32, message = "hqk,hkd->hqd"}> : () -> ()
      %cst_32 = arith.constant dense<0.000000e+00> : vector<4x16x32xf32>
      %64 = tpu.matmul %63, %22, %cst_32 {dimension_numbers = #tpu.dot_dimension_numbers<[2], [1], [1], [2], [0, 0, 0, 1, 1, 2], [0], [0]>} : vector<4x16x16xbf16>, vector<4x16x32xbf16>, vector<4x16x32xf32> -> vector<4x16x32xf32>
      "tpu.trace_stop"() : () -> ()
      %c0_33 = arith.constant 0 : index
      %c0_34 = arith.constant 0 : index
      %c0_35 = arith.constant 0 : index
      %65 = vector.load %arg9[%c0_33, %c0_34, %c0_35] : memref<4x16x32xf32, #tpu.memory_space<vmem>>, vector<4x16x32xf32>
      %66 = vector.broadcast %49 : vector<4x16x1xf32> to vector<4x16x32xf32>
      %67 = arith.mulf %66, %65 : vector<4x16x32xf32>
      %68 = arith.addf %67, %64 : vector<4x16x32xf32>
      %c0_36 = arith.constant 0 : index
      %c0_37 = arith.constant 0 : index
      %c0_38 = arith.constant 0 : index
      %69 = vector.load %arg9[%c0_36, %c0_37, %c0_38] : memref<4x16x32xf32, #tpu.memory_space<vmem>>, vector<4x16x32xf32>
      tpu.vector_store %arg9[%c0_36, %c0_37, %c0_38], %68 {strides = array<i32>} : memref<4x16x32xf32, #tpu.memory_space<vmem>>, vector<4x16x32xf32>,
      %c0_39 = arith.constant 0 : index
      %c0_40 = arith.constant 0 : index
      %c0_41 = arith.constant 0 : index
      %70 = vector.load %arg7[%c0_39, %c0_40, %c0_41] : memref<4x16x1xf32, #tpu.memory_space<vmem>>, vector<4x16x1xf32>
      tpu.vector_store %arg7[%c0_39, %c0_40, %c0_41], %47 {strides = array<i32>} : memref<4x16x1xf32, #tpu.memory_space<vmem>>, vector<4x16x1xf32>,
    } else {
    }
    %c2_i32 = arith.constant 2 : i32
    %14 = arith.cmpi eq, %arg2, %c2_i32 : i32
    %15 = arith.extui %14 : i1 to i32
    %c0_i32_5 = arith.constant 0 : i32
    %16 = arith.cmpi ne, %15, %c0_i32_5 : i32
    scf.if %16 {
      %c0 = arith.constant 0 : index
      %c0_6 = arith.constant 0 : index
      %c0_7 = arith.constant 0 : index
      %17 = vector.load %arg8[%c0, %c0_6, %c0_7] : memref<4x16x1xf32, #tpu.memory_space<vmem>>, vector<4x16x1xf32>
      %cst = arith.constant 0.000000e+00 : f32
      %18 = vector.broadcast %cst : f32 to vector<4x16x1xf32>
      %19 = arith.cmpf oeq, %17, %18 : vector<4x16x1xf32>
      %cst_8 = arith.constant 1.000000e+00 : f32
      %20 = vector.broadcast %cst_8 : f32 to vector<4x16x1xf32>
      %21 = arith.select %19, %20, %17 : vector<4x16x1xi1>, vector<4x16x1xf32>
      %22 = tpu.reciprocal %21 {approx = true} : vector<4x16x1xf32> -> vector<4x16x1xf32>
      %c0_9 = arith.constant 0 : index
      %c0_10 = arith.constant 0 : index
      %c0_11 = arith.constant 0 : index
      %23 = vector.load %arg9[%c0_9, %c0_10, %c0_11] : memref<4x16x32xf32, #tpu.memory_space<vmem>>, vector<4x16x32xf32>
      %24 = vector.broadcast %22 : vector<4x16x1xf32> to vector<4x16x32xf32>
      %25 = arith.mulf %23, %24 : vector<4x16x32xf32>
      %26 = vector.extract_strided_slice %25 {offsets = [0, 0, 0], sizes = [1, 16, 32], strides = [1, 1, 1]} : vector<4x16x32xf32> to vector<1x16x32xf32>
      %27 = vector.shape_cast %26 : vector<1x16x32xf32> to vector<16x32xf32>
      %28 = vector.extract_strided_slice %25 {offsets = [1, 0, 0], sizes = [1, 16, 32], strides = [1, 1, 1]} : vector<4x16x32xf32> to vector<1x16x32xf32>
      %29 = vector.shape_cast %28 : vector<1x16x32xf32> to vector<16x32xf32>
      %30 = vector.extract_strided_slice %25 {offsets = [2, 0, 0], sizes = [1, 16, 32], strides = [1, 1, 1]} : vector<4x16x32xf32> to vector<1x16x32xf32>
      %31 = vector.shape_cast %30 : vector<1x16x32xf32> to vector<16x32xf32>
      %32 = vector.extract_strided_slice %25 {offsets = [3, 0, 0], sizes = [1, 16, 32], strides = [1, 1, 1]} : vector<4x16x32xf32> to vector<1x16x32xf32>
      %33 = vector.shape_cast %32 : vector<1x16x32xf32> to vector<16x32xf32>
      %34 = tpu.concatenate %27, %29, %31, %33 in 1 : vector<16x32xf32>, vector<16x32xf32>, vector<16x32xf32>, vector<16x32xf32> -> vector<16x128xf32>
      %35 = arith.truncf %34 : vector<16x128xf32> to vector<16x128xbf16>
      %c0_12 = arith.constant 0 : index
      %c0_13 = arith.constant 0 : index
      %c0_14 = arith.constant 0 : index
      %36 = vector.load %arg6[%c0_12, %c0_13, %c0_14] : memref<1x16x128xbf16, #tpu.memory_space<vmem>>, vector<1x16x128xbf16>
      %37 = vector.shape_cast %36 : vector<1x16x128xbf16> to vector<16x128xbf16>
      %38 = vector.shape_cast %35 : vector<16x128xbf16> to vector<1x16x128xbf16>
      tpu.vector_store %arg6[%c0_12, %c0_13, %c0_14], %38 {strides = array<i32>} : memref<1x16x128xbf16, #tpu.memory_space<vmem>>, vector<1x16x128xbf16>,
    } else {
    }
    return
  }
  func.func @transform_0(%arg0: i32, %arg1: i32, %arg2: i32) -> (i32, i32, i32, i32) {
    %c0_i32 = arith.constant 0 : i32
    %c0_i32_0 = arith.constant 0 : i32
    %c0_i32_1 = arith.constant 0 : i32
    return %arg0, %c0_i32, %arg1, %c0_i32_0 : i32, i32, i32, i32
  }
  func.func @transform_1(%arg0: i32, %arg1: i32, %arg2: i32) -> (i32, i32, i32, i32) {
    %c0_i32 = arith.constant 0 : i32
    %0 = arith.subi %arg2, %c0_i32 : i32
    %1 = arith.addi %arg1, %0 : i32
    %c1_i32 = arith.constant 1 : i32
    %2 = arith.subi %1, %c1_i32 : i32
    %c0_i32_0 = arith.constant 0 : i32
    %3 = arith.cmpi slt, %arg2, %c0_i32_0 : i32
    %c0_i32_1 = arith.constant 0 : i32
    %c3_i32 = arith.constant 3 : i32
    %4 = arith.maxsi %c0_i32_1, %2 : i32
    %5 = arith.minsi %c3_i32, %4 : i32
    %6 = arith.select %3, %arg2, %5 : i32
    %c0_i32_2 = arith.constant 0 : i32
    %c0_i32_3 = arith.constant 0 : i32
    %c0_i32_4 = arith.constant 0 : i32
    return %arg0, %c0_i32_2, %6, %c0_i32_3 : i32, i32, i32, i32
  }
  func.func @transform_2(%arg0: i32, %arg1: i32, %arg2: i32) -> (i32, i32, i32, i32) {
    %c0_i32 = arith.constant 0 : i32
    %0 = arith.subi %arg2, %c0_i32 : i32
    %1 = arith.addi %arg1, %0 : i32
    %c1_i32 = arith.constant 1 : i32
    %2 = arith.subi %1, %c1_i32 : i32
    %c0_i32_0 = arith.constant 0 : i32
    %3 = arith.cmpi slt, %arg2, %c0_i32_0 : i32
    %c0_i32_1 = arith.constant 0 : i32
    %c3_i32 = arith.constant 3 : i32
    %4 = arith.maxsi %c0_i32_1, %2 : i32
    %5 = arith.minsi %c3_i32, %4 : i32
    %6 = arith.select %3, %arg2, %5 : i32
    %c0_i32_2 = arith.constant 0 : i32
    %c0_i32_3 = arith.constant 0 : i32
    %c0_i32_4 = arith.constant 0 : i32
    return %arg0, %c0_i32_2, %6, %c0_i32_3 : i32, i32, i32, i32
  }
  func.func @transform_3(%arg0: i32, %arg1: i32, %arg2: i32) -> (i32, i32, i32) {
    %c0_i32 = arith.constant 0 : i32
    %c0_i32_0 = arith.constant 0 : i32
    return %arg0, %arg1, %c0_i32 : i32, i32, i32
  }
}

</mosaic_0001>

<bundles_post_ra>
// kernel: tpu_custom_call.1
= control target key start
LH: loop header
LB: loop body
LE: loop exit
PB: predicated region body
PF: predicated region fallthrough
CT: control target
= control target key end

     0   :  { %8 = vsyncpa [#allocation9], 0  ;;  %s2367_s0 = inlined_call_operand.vmem [shape: bf16[2,4,64,32], index: 0, kind: input, shape index: {}]   ;;  %s2368_s1 = inlined_call_operand.vmem [shape: bf16[2,4,64,32], index: 1, kind: input, shape index: {}]   ;;  %s2369_s2 = inlined_call_operand.vmem [shape: bf16[2,4,64,32], index: 2, kind: input, shape index: {}]   ;;  %s2370_s3 = inlined_call_operand.hbm [shape: bf16[2,64,128], index: 3, kind: output, shape index: {}]  }
   0x1   :  { %10 = vsyncpa [#allocation9 + $0x1], 0  ;;  %s1916_s12 = smov 0   ;;  %s1918_s13 = smov 0  }
   0x2   :  { %s1920_s14 = smov 0   ;;  %s1922_s15 = smov 0  }
   0x3   :  { %s1924_s16 = smov 0   ;;  %s1926_s17 = smov 0  }
   0x4   :  { %s1928_s18 = smov 0   ;;  %s1930_s19 = smov 0  }
   0x5   :  { %s1932_s20 = smov 0   ;;  %s1934_s21 = smov 0  }
   0x6   :  { %s1936_s22 = smov 0   ;;  %s1938_s23 = smov 0  }
   0x7 LB: > { %2375 = sst [smem:[#allocation11_spill]] %s1873_s20  ;;  %s1425_s24 = sadd.s32 4294967295, %s1885_s23   ;;  %s1885_s23 = sphi %s1938_s23, %s16_s23   ;;  %s1881_s22 = sphi %s1936_s22, %s2401_s22   ;;  %s1877_s21 = sphi %s1934_s21, %s2400_s21   ;;  %s1873_s20 = sphi %s1932_s20, %s2390_s20   ;;  %s1869_s19 = sphi %s1930_s19, %s2399_s19   ;;  %s1865_s18 = sphi %s1928_s18, %s2398_s18   ;;  %s1861_s17 = sphi %s1926_s17, %s2389_s17   ;;  %s1857_s16 = sphi %s1924_s16, %s2397_s16   ;;  %s1853_s15 = sphi %s1922_s15, %s2396_s15   ;;  %s1849_s14 = sphi %s1920_s14, %s2395_s14   ;;  %s1845_s13 = sphi %s1918_s13, %s2394_s13   ;;  %s1841_s12 = sphi %s1916_s12, %s2393_s12  }
   0x8   : > { %s1426_s25 = sadd.s32 4294967294, %s1885_s23   ;;  %s28_s26 = sadd.s32 1, %s1873_s20 }
   0x9   : > { %p29_p0 = scmp.ge.s32.totalorder %s28_s26, 3  ;;  %s31_s27 = sadd.s32 1, %s1877_s21 }
   0xa   : > { %s35_s28 = sadd.s32 1, %s1881_s22  ;;  %p51_p1 = scmp.ne.s32.totalorder %s1857_s16, %s1853_s15 }
   0xb   : > { %s2403_s26 = smov (%p29_p0, %s28_s26), 0  ;;  %s2405_s27 = smov (!%p29_p0, %s31_s27), %s1877_s21 }
   0xc   : > { %2376 = sst [smem:[#allocation12_spill]] %s2403_s26  ;;  %p52_p2 = scmp.eq.s32.totalorder %s1885_s23, 0 }
   0xd   : > { %s67_s29 = sadd.s32 %s1873_s20, %s1877_s21  ;;  %p33_p3 = scmp.ge.s32.totalorder %s2405_s27, 4 }
   0xe   : > { %s1427_s30 = sadd.s32 4294967295, %s67_s29  ;;  %p1994_p4 = por %p52_p2, %p51_p1 }
   0xf   : > { %s2407_s27 = smov (%p33_p3, %s2405_s27), 0  ;;  %s2409_s28 = smov (!%p33_p3, %s35_s28), %s1881_s22 }
  0x10   : > { %2378 = sst [smem:[#allocation13_spill]] %s2407_s27  ;;  %s40_s5 = ssub.s32 %s1877_s21, %s2407_s27 }
  0x11   : > { %p70_p5 = scmp.gt.s32.totalorder %s1427_s30, 0  ;;  %p37_p6 = scmp.ge.s32.totalorder %s2409_s28, 2 }
  0x12   : > { %p1428_p7 = scmp.lt.s32.totalorder %s1427_s30, 3  ;;  %s75_s7 = sadd.s32 %s2407_s27, %s2403_s26 }
  0x13   : > { %s2411_s30 = smov (!%p70_p5, %s1427_s30), 0  ;;  %s2413_s28 = smov (%p37_p6, %s2409_s28), 0 }
  0x14   : > { %2379 = sst [smem:[#allocation14_spill]] %s2413_s28  ;;  %s2415_s30 = smov (!%p1428_p7, %s2411_s30), 3 }
  0x15   : > { %s39_s6 = ssub.s32 %s1881_s22, %s2413_s28  ;;  %s44_s9 = sadd.s32 1, %s1857_s16 }
  0x16   : > { %s41_s8 = sor.u32 %s40_s5, %s39_s6  ;;  %s1433_s10 = sadd.s32 4294967295, %s75_s7 }
  0x17   : > { %p42_p8 = scmp.eq.s32.totalorder %s41_s8, 0  ;;  %p78_p9 = scmp.gt.s32.totalorder %s1433_s10, 0 }
  0x18   : > { %p1434_p10 = scmp.lt.s32.totalorder %s1433_s10, 3  ;;  %p95_p11 = scmp.ne.s32.totalorder %s1849_s14, %s1845_s13 }
  0x19   : > { %s2013_s11 = scalar_select %p42_p8, %s1857_s16, %s44_s9  }
  0x1a   : > { %s2417_s10 = smov (!%p78_p9, %s1433_s10), 0  ;;  %p2019_p12 = por %p95_p11, %p52_p2 }
  0x1b   : > { %2380 = sst [smem:[#allocation15_spill]] %s2013_s11  ;;  %p171_p13 = scmp.eq.s32.totalorder %s1425_s24, 23 }
  0x1c   : > { %s2419_s10 = smov (!%p1434_p10, %s2417_s10), 3  ;;  %p176_p3 = scmp.ne.s32.totalorder %s1853_s15, %s1841_s12 }
  0x1d   : > { %p2028_p0 = por %p171_p13, %p51_p1  ;;  %p177_p5 = scmp.eq.s32.totalorder %s1426_s25, 23 }
  0x1e   : > { %s84_s7 = ssub.s32 %s2415_s30, %s2419_s10  ;;  %s88_s8 = sadd.s32 1, %s1849_s14 }
  0x1f   : > { %s85_s9 = sor.u32 %s84_s7, %s39_s6  ;;  %p2038_p6 = por %p177_p5, %p176_p3 }
  0x20   : > { %p86_p2 = scmp.eq.s32.totalorder %s85_s9, 0  ;;  %p1452_p7 = scmp.ge.s32.totalorder %s1885_s23, 24 }
  0x22   : > { %s2043_s27 = scalar_select %p86_p2, %s1849_s14, %s88_s8  }
  0x23   : > { %193 = sbr.rel (%p1452_p7) target bundleno = 73 (0x49), region = 16 }
  0x28   : > { %196 = sbr.rel (!%p1994_p4) target bundleno = 51 (0x33), region = 20  ;;  %s198_s24 = sand.u32 (%p1994_p4), 1, %s1857_s16  }
  0x29   : > { %s1454_s25 = sshll.u32 (%p1994_p4), %s1877_s21, 1  ;;  %s1453_s10 = sshll.u32 (%p1994_p4), %s198_s24, 5 }
  0x2a   : > { %s1455_s6 = sshll.u32 (%p1994_p4), %s1881_s22, 5  ;;  %s200_s9 = scalar_lea.vmem (%p1994_p4), [#allocation5], %s1453_s10 }
  0x2b   : > { %s203_s7 = sadd.s32 (%p1994_p4), %s1455_s6, %s1454_s25 }
  0x2c   : > { %s1456_s26 = sshll.u32 (%p1994_p4), %s203_s7, 2 }
  0x2d   : > { %s205_s8 = scalar_lea.vmem %s2367_s0, %s1456_s26 }
  0x2e   : > { %v222_v0 = vld [vmem:[%s205_s8] sm:$0xff]  }
  0x2f   : > { %v226_v1 = vld [vmem:[%s205_s8 + $0x20] sm:$0xff]   ;;  %223 = vst [vmem:[%s200_s9] sm:$0xff] %v222_v0  }
  0x30   : > { %v230_v2 = vld [vmem:[%s205_s8 + $0x40] sm:$0xff]   ;;  %227 = vst [vmem:[%s200_s9 + $0x8] sm:$0xff] %v226_v1  }
  0x31   : > { %v234_v3 = vld [vmem:[%s205_s8 + $0x60] sm:$0xff]   ;;  %231 = vst [vmem:[%s200_s9 + $0x10] sm:$0xff] %v230_v2  }
  0x32   : > { %235 = vst [vmem:[%s200_s9 + $0x18] sm:$0xff] %v234_v3  }
  0x33 PF: > { %277 = sbr.rel (!%p2019_p12) target bundleno = 62 (0x3e), region = 61  ;;  %s279_s4 = sand.u32 (%p2019_p12), 1, %s1849_s14  }
  0x34   : > { %s1464_s24 = sshll.u32 (%p2019_p12), %s2415_s30, 1  ;;  %s1457_s20 = sshll.u32 (%p2019_p12), %s279_s4, 5 }
  0x35   : > { %s1465_s26 = sshll.u32 (%p2019_p12), %s1881_s22, 5  ;;  %s281_s8 = scalar_lea.vmem (%p2019_p12), [#allocation6], %s1457_s20 }
  0x36   : > { %s292_s11 = sadd.s32 (%p2019_p12), %s1465_s26, %s1464_s24 }
  0x37   : > { %s1466_s25 = sshll.u32 (%p2019_p12), %s292_s11, 2 }
  0x38   : > { %s294_s7 = scalar_lea.vmem %s2368_s1, %s1466_s25 }
  0x39   : > { %v311_v4 = vld [vmem:[%s294_s7] sm:$0xff]  }
  0x3a   : > { %v315_v5 = vld [vmem:[%s294_s7 + $0x20] sm:$0xff]   ;;  %312 = vst [vmem:[%s281_s8] sm:$0xff] %v311_v4  }
  0x3b   : > { %v319_v6 = vld [vmem:[%s294_s7 + $0x40] sm:$0xff]   ;;  %316 = vst [vmem:[%s281_s8 + $0x8] sm:$0xff] %v315_v5  }
  0x3c   : > { %v323_v7 = vld [vmem:[%s294_s7 + $0x60] sm:$0xff]   ;;  %320 = vst [vmem:[%s281_s8 + $0x10] sm:$0xff] %v319_v6  }
  0x3d   : > { %324 = vst [vmem:[%s281_s8 + $0x18] sm:$0xff] %v323_v7  }
  0x3e PF: > { %366 = sbr.rel (!%p2019_p12) target bundleno = 73 (0x49), region = 102  ;;  %s368_s9 = sand.u32 (%p2019_p12), 1, %s1849_s14  }
  0x3f   : > { %s1474_s4 = sshll.u32 (%p2019_p12), %s2415_s30, 1  ;;  %s1467_s24 = sshll.u32 (%p2019_p12), %s368_s9, 5 }
  0x40   : > { %s1475_s26 = sshll.u32 (%p2019_p12), %s1881_s22, 5  ;;  %s370_s7 = scalar_lea.vmem (%p2019_p12), [#allocation7], %s1467_s24 }
  0x41   : > { %s381_s11 = sadd.s32 (%p2019_p12), %s1475_s26, %s1474_s4 }
  0x42   : > { %s1476_s25 = sshll.u32 (%p2019_p12), %s381_s11, 2 }
  0x43   : > { %s383_s10 = scalar_lea.vmem %s2369_s2, %s1476_s25 }
  0x44   : > { %v400_v8 = vld [vmem:[%s383_s10] sm:$0xff]  }
  0x45   : > { %v404_v9 = vld [vmem:[%s383_s10 + $0x20] sm:$0xff]   ;;  %401 = vst [vmem:[%s370_s7] sm:$0xff] %v400_v8  }
  0x46   : > { %v408_v10 = vld [vmem:[%s383_s10 + $0x40] sm:$0xff]   ;;  %405 = vst [vmem:[%s370_s7 + $0x8] sm:$0xff] %v404_v9  }
  0x47   : > { %v412_v11 = vld [vmem:[%s383_s10 + $0x60] sm:$0xff]   ;;  %409 = vst [vmem:[%s370_s7 + $0x10] sm:$0xff] %v408_v10  }
  0x48   : > { %413 = vst [vmem:[%s370_s7 + $0x18] sm:$0xff] %v412_v11  }
  0x49 PF: > { %p1477_p1 = scmp.ge.s32.totalorder %s1885_s23, 1  ;;  %p454_p4 = scmp.lt.s32.totalorder %s1885_s23, 25 }
  0x4b   : > { %p455_p8 = pnand %p1477_p1, %p454_p4 }
  0x4c   : > { %s2073_s30 = sand.u32 (!%p455_p8), 1, %s1853_s15   ;;  %s468_s29 = sand.u32 (!%p455_p8), 1, %s1845_s13  }
  0x4d   : > { %458 = sbr.rel (%p455_p8) target bundleno = 955 (0x3bb), region = 143  ;;  %s1478_s8 = sshll.u32 (!%p455_p8), %s2073_s30, 5 }
  0x4e   : > { %s1479_s9 = sshll.u32 (!%p455_p8), %s468_s29, 5  ;;  %s1481_s4 = sshll.u32 (!%p455_p8), %s2073_s30, 3 }
  0x4f   : > { %s2078_s24 = scalar_lea.vmem (!%p455_p8), [#allocation5], %s1478_s8  ;;  %s2080_s26 = scalar_lea.vmem (!%p455_p8), [#allocation6], %s1479_s9 }
  0x50   : > { %s2082_s11 = scalar_lea.vmem (!%p455_p8), [#allocation7], %s1479_s9  ;;  %s2084_s25 = scalar_lea.vmem (!%p455_p8), [#allocation8], %s1481_s4 }
  0x51   : > { %p1482_p9 = scmp.ne.s32.totalorder (!%p455_p8), %s1861_s17, 0 }
  0x53   : > { %530 = sbr.rel (%p1482_p9) target bundleno = 113 (0x71), region = 159 }
  0x58   : > { %vm531_vm0 = vcmask 7168   ;;  %v1887_v12 = vmov -1e+30   ;;  %v1888_v13 = vmov 0.0   ;;  %vm548_vm1 = vcmask 261120  }
  0x59   : > { %532 = vst.msk [vmem:[#allocation2] sm:$0xff] %vm531_vm0, %v1887_v12 }
  0x5a   : > { %533 = vst.msk [vmem:[#allocation2 + $0x8] sm:$0xff] %vm531_vm0, %v1887_v12 }
  0x5b   : > { %534 = vst.msk [vmem:[#allocation2 + $0x10] sm:$0xff] %vm531_vm0, %v1887_v12 }
  0x5c   : > { %535 = vst.msk [vmem:[#allocation2 + $0x18] sm:$0xff] %vm531_vm0, %v1887_v12 }
  0x5d   : > { %536 = vst.msk [vmem:[#allocation2 + $0x20] sm:$0xff] %vm531_vm0, %v1887_v12 }
  0x5e   : > { %537 = vst.msk [vmem:[#allocation2 + $0x28] sm:$0xff] %vm531_vm0, %v1887_v12 }
  0x5f   : > { %538 = vst.msk [vmem:[#allocation2 + $0x30] sm:$0xff] %vm531_vm0, %v1887_v12 }
  0x60   : > { %539 = vst.msk [vmem:[#allocation2 + $0x38] sm:$0xff] %vm531_vm0, %v1887_v12 }
  0x61   : > { %540 = vst.msk [vmem:[#allocation3] sm:$0xff] %vm531_vm0, %v1888_v13 }
  0x62   : > { %541 = vst.msk [vmem:[#allocation3 + $0x8] sm:$0xff] %vm531_vm0, %v1888_v13 }
  0x63   : > { %542 = vst.msk [vmem:[#allocation3 + $0x10] sm:$0xff] %vm531_vm0, %v1888_v13 }
  0x64   : > { %543 = vst.msk [vmem:[#allocation3 + $0x18] sm:$0xff] %vm531_vm0, %v1888_v13 }
  0x65   : > { %544 = vst.msk [vmem:[#allocation3 + $0x20] sm:$0xff] %vm531_vm0, %v1888_v13 }
  0x66   : > { %545 = vst.msk [vmem:[#allocation3 + $0x28] sm:$0xff] %vm531_vm0, %v1888_v13 }
  0x67   : > { %546 = vst.msk [vmem:[#allocation3 + $0x30] sm:$0xff] %vm531_vm0, %v1888_v13 }
  0x68   : > { %547 = vst.msk [vmem:[#allocation3 + $0x38] sm:$0xff] %vm531_vm0, %v1888_v13 }
  0x69   : > { %549 = vst.msk [vmem:[#allocation4] sm:$0xff] %vm548_vm1, %v1888_v13 }
  0x6a   : > { %550 = vst.msk [vmem:[#allocation4 + $0x8] sm:$0xff] %vm548_vm1, %v1888_v13 }
  0x6b   : > { %551 = vst.msk [vmem:[#allocation4 + $0x10] sm:$0xff] %vm548_vm1, %v1888_v13 }
  0x6c   : > { %552 = vst.msk [vmem:[#allocation4 + $0x18] sm:$0xff] %vm548_vm1, %v1888_v13 }
  0x6d   : > { %553 = vst.msk [vmem:[#allocation4 + $0x20] sm:$0xff] %vm548_vm1, %v1888_v13 }
  0x6e   : > { %554 = vst.msk [vmem:[#allocation4 + $0x28] sm:$0xff] %vm548_vm1, %v1888_v13 }
  0x6f   : > { %555 = vst.msk [vmem:[#allocation4 + $0x30] sm:$0xff] %vm548_vm1, %v1888_v13 }
  0x70   : > { %556 = vst.msk [vmem:[#allocation4 + $0x38] sm:$0xff] %vm548_vm1, %v1888_v13 }
  0x71 PF: > { %p557_p10 = scmp.lt.s32.totalorder %s1861_s17, 0  ;;  %s558_s13 = sadd.s32 %s1861_s17, %s1865_s18 }
  0x72   : > { %s1483_s6 = sadd.s32 4294967295, %s558_s13 }
  0x73   : > { %s2107_s20 = scalar_select %p557_p10, %s1861_s17, %s1483_s6 }
  0x74   : > { %p561_p11 = scmp.ge.s32.totalorder %s1483_s6, 0  ;;  %p562_p12 = scmp.lt.s32.totalorder %s1483_s6, 4 }
  0x76   : > { %p563_p13 = pnand %p562_p12, %p561_p11 }
  0x78   : > { %p564_p3 = pneg %p563_p13 }
  0x7a   : > { %p565_p5 = por %p564_p3, %p557_p10 }
  0x7b   : > { %v1565_v14 = vld [vmem:[%s2080_s26] sm:$0xff] (%p565_p5)  ;;  %vm603_vm2 = vcmask (%p565_p5), 261120   ;;  %v1566_v15 = vld [vmem:[%s2080_s26 + $0x8] sm:$0xff] (%p565_p5)  ;;  %v1567_v16 = vld [vmem:[%s2080_s26 + $0x10] sm:$0xff] (%p565_p5)  ;;  %v715_v26 = vlaneseq (%p565_p5)  ;;  %s1520_s10 = sshll.u32 (%p565_p5), %s1865_s18, 4  ;;  %s1521_s7 = sshll.u32 (%p565_p5), %s2107_s20, 4 }
  0x7c   : > { %568 = sbr.rel (!%p565_p5) target bundleno = 671 (0x29f), region = 163  ;;  %v1568_v17 = vld [vmem:[%s2080_s26 + $0x18] sm:$0xff] (%p565_p5)  ;;  %v608_v18 = vsel (%p565_p5), %vm603_vm2, %v1565_v14, 0  ;;  %v638_v19 = vsel (%p565_p5), %vm603_vm2, %v1566_v15, 0  ;;  %v668_v20 = vsel (%p565_p5), %vm603_vm2, %v1567_v16, 0  ;;  %v1561_v22 = vld [vmem:[%s2078_s24] sm:$0xff] (%p565_p5)  ;;  %v718_v29 = vstv (%p565_p5), %s1520_s10 }
  0x7d   : > { %617 = vmatpush.bf16.xpose.msra.mxu0 (%p565_p5), %v608_v18  ;;  %647 = vmatpush.bf16.xpose.msra.mxu1 (%p565_p5), %v638_v19  ;;  %v698_v21 = vsel (%p565_p5), %vm603_vm2, %v1568_v17, 0  ;;  %v1562_v23 = vld [vmem:[%s2078_s24 + $0x8] sm:$0xff] (%p565_p5)  ;;  %v1563_v24 = vld [vmem:[%s2078_s24 + $0x10] sm:$0xff] (%p565_p5)  ;;  %v1564_v25 = vld [vmem:[%s2078_s24 + $0x18] sm:$0xff] (%p565_p5)  ;;  %v716_v27 = vshrl.u32 (%p565_p5), %v715_v26, 7  ;;  %v723_v28 = vand.u32 (%p565_p5), 127, %v715_v26  ;;  %v724_v30 = vstv (%p565_p5), %s1521_s7 }
  0x7e   : > { %677 = vmatpush.bf16.xpose.msra.mxu2 (%p565_p5), %v668_v20  ;;  %707 = vmatpush.bf16.xpose.msra.mxu3 (%p565_p5), %v698_v21  ;;  %vm759_vm8 = vcmask (%p565_p5), 130048   ;;  %v1889_v3 = vmov (%p565_p5), 0   ;;  %v753_v4 = vld [vmem:[#allocation2 + $0x10] sm:$0xff] (%p565_p5)  ;;  %v751_v5 = vld [vmem:[#allocation2] sm:$0xff] (%p565_p5)  ;;  %vm936_vm11 = vcmask (%p565_p5), 7168   ;;  %v752_v12 = vld [vmem:[#allocation2 + $0x8] sm:$0xff] (%p565_p5) }
  0x7f   : > { %v719_v31 = vadd.s32 (%p565_p5), %v718_v29, %v716_v27  ;;  %v725_v32 = vadd.s32 (%p565_p5), %v724_v30, %v723_v28  ;;  %v717_v34 = vadd.s32 (%p565_p5), 8, %v716_v27  ;;  %1692 = vset.pattern.permute.xlu1 (%p565_p5), %v1889_v3  ;;  %1690 = vset.pattern.permute.xlu2 (%p565_p5), %v1889_v3  ;;  %v2187_v10 = vld [vmem:[#allocation2 + $0x30] sm:$0xff] (%p565_p5)  ;;  %v755_v11 = vld [vmem:[#allocation2 + $0x20] sm:$0xff] (%p565_p5)  ;;  %v754_v21 = vld [vmem:[#allocation2 + $0x18] sm:$0xff] (%p565_p5) }
  0x80   : > { %1691 = vset.pattern.permute.xlu0 (%p565_p5), %v1889_v3 }
  0x81   : > { %v726_v33 = vsub.s32 %v719_v31, %v725_v32  ;;  %v720_v36 = vadd.s32 %v718_v29, %v717_v34  ;;  %vm736_vm5 = vcmp.ge.s32.totalorder %v725_v32, 64  ;;  %v2210_v31 = vld [vmem:[#allocation2 + $0x38] sm:$0xff] }
  0x83   : > { %v729_v35 = vsub.s32 0, %v726_v33  ;;  %vm728_vm3 = vcmp.lt.s32.totalorder %v726_v33, 0  ;;  %v727_v38 = vsub.s32 %v720_v36, %v725_v32 }
  0x84   : > { %1492 = vmatmul.msk.bf16.vlgmr.msra.gmra.mxu0 %vm603_vm2, %v1561_v22  ;;  %1501 = vmatmul.msk.bf16.vlgmr.msra.gmra.mxu1 %vm603_vm2, %v1562_v23  ;;  %v2199_v22 = vld [vmem:[#allocation2 + $0x28] sm:$0xff] }
  0x85   : > { %1510 = vmatmul.msk.bf16.vlgmr.msra.gmra.mxu2 %vm603_vm2, %v1563_v24  ;;  %1519 = vmatmul.msk.bf16.vlgmr.msra.gmra.mxu3 %vm603_vm2, %v1564_v25  ;;  %v730_v37 = vsel %vm728_vm3, %v729_v35, %v726_v33  ;;  %v732_v39 = vsub.s32 0, %v727_v38  ;;  %vm731_vm6 = vcmp.lt.s32.totalorder %v727_v38, 0 }
  0x86   : > { %vm734_vm4 = vcmp.gt.s32.totalorder %v730_v37, 4 }
  0x87   : > { %vm2128_vm7 = vmor %vm734_vm4, %vm736_vm5  ;;  %v733_v43 = vsel %vm731_vm6, %v732_v39, %v727_v38 }
  0x88   : > { %vm735_vm9 = vcmp.gt.s32.totalorder %v733_v43, 4 }
  0x89   : > { %vm2145_vm10 = vmor %vm735_vm9, %vm736_vm5 }
 0x101   : > { %v619_v41 = vpop.f32.mrf.mxu0  ;;  %v649_v42 = vpop.f32.mrf.mxu1 }
 0x102   : > { %v2134_v44 = vsel %vm2128_vm7, -1e+30, %v619_v41  ;;  %v2138_v45 = vsel %vm2128_vm7, -1e+30, %v649_v42 }
 0x103   : > { %v766_v46 = vsel %vm759_vm8, %v2138_v45, -inf  ;;  %v760_v47 = vsel %vm759_vm8, %v2134_v44, -inf }
 0x104   : > { %767 = vmax.xlane.f32.xlu0 %v766_v46  ;;  %761 = vmax.xlane.f32.xlu2 %v760_v47 }
 0x108   : > { %v679_v49 = vpop.f32.mrf.mxu2  ;;  %v709_v50 = vpop.f32.mrf.mxu3 }
 0x109   : > { %v2151_v51 = vsel %vm2128_vm7, -1e+30, %v679_v49  ;;  %v2155_v52 = vsel %vm2128_vm7, -1e+30, %v709_v50  ;;  %v621_v53 = vpop.f32.mrf.mxu0  ;;  %v651_v58 = vpop.f32.mrf.mxu1 }
 0x10a   : > { %v2159_v54 = vsel %vm2145_vm10, -1e+30, %v621_v53  ;;  %v778_v55 = vsel %vm759_vm8, %v2155_v52, -inf  ;;  %v772_v56 = vsel %vm759_vm8, %v2151_v51, -inf  ;;  %v2169_v59 = vsel %vm2145_vm10, -1e+30, %v651_v58 }
 0x10b   : > { %779 = vmax.xlane.f32.xlu1 %v778_v55  ;;  %v763_v57 = vsel %vm759_vm8, %v2159_v54, -inf  ;;  %v769_v62 = vsel %vm759_vm8, %v2169_v59, -inf  ;;  %v1571_v53 = vld [vmem:[%s2082_s11 + $0x10] sm:$0xff]  ;;  %v1572_v55 = vld [vmem:[%s2082_s11 + $0x18] sm:$0xff] }
 0x10c   : > { %773 = vmax.xlane.f32.xlu0 %v772_v56  ;;  %764 = vmax.xlane.f32.xlu2 %v763_v57 }
 0x10d   : > { %1030 = vmatpush.bf16.msrb.mxu2 %v1571_v53  ;;  %1058 = vmatpush.bf16.msrb.mxu3 %v1572_v55 }
 0x110   : > { %v681_v60 = vpop.f32.mrf.mxu2  ;;  %v711_v0 = vpop.f32.mrf.mxu3 }
 0x111   : > { %v2173_v61 = vsel %vm2145_vm10, -1e+30, %v681_v60  ;;  %v2181_v1 = vsel %vm2145_vm10, -1e+30, %v711_v0 }
 0x112   : > { %v775_v63 = vsel %vm759_vm8, %v2173_v61, -inf  ;;  %v781_v2 = vsel %vm759_vm8, %v2181_v1, -inf }
 0x113   : > { %770 = vmax.xlane.f32.xlu1 %v769_v62  ;;  %v1569_v62 = vld [vmem:[%s2082_s11] sm:$0xff] }
 0x114   : > { %776 = vmax.xlane.f32.xlu0 %v775_v63  ;;  %v1570_v63 = vld [vmem:[%s2082_s11 + $0x8] sm:$0xff]  ;;  %974 = vmatpush.bf16.msrb.mxu0 %v1569_v62 }
 0x115   : > { %1002 = vmatpush.bf16.msrb.mxu1 %v1570_v63 }
 0x11b   : > { %782 = vmax.xlane.f32.xlu1 %v781_v2 }
 0x177   : > { %v768_v6 = vpop.xlane.xlu0 %767  ;;  %v762_v7 = vpop.xlane.xlu2 %761 }
 0x178   : > { %v786_v8 = vmax.f32 %v753_v4, %v768_v6  ;;  %v784_v9 = vmax.f32 %v751_v5, %v762_v7 }
 0x17a   : > { %1139 = vst.msk [vmem:[#allocation2 + $0x10] sm:$0xff] %vm936_vm11, %v786_v8  ;;  %v794_v20 = vsub.f32 %v753_v4, %v786_v8  ;;  %v792_v28 = vsub.f32 %v751_v5, %v784_v9 }
 0x17b   : > { %1137 = vst.msk [vmem:[#allocation2] sm:$0xff] %vm936_vm11, %v784_v9 }
 0x17c   : > { %v804_v24 = vmul.f32 1.442695, %v794_v20  ;;  %v800_v32 = vmul.f32 1.442695, %v792_v28 }
 0x17e   : > { %v780_v13 = vpop.xlane.xlu1 %779  ;;  %1693 = vpow2.f32 %v804_v24 }
 0x17f   : > { %v2190_v14 = vmax.f32 %v2187_v10, %v780_v13  ;;  %v774_v15 = vpop.xlane.xlu0 %773  ;;  %v765_v16 = vpop.xlane.xlu2 %764  ;;  %1695 = vpow2.f32 %v800_v32 }
 0x180   : > { %v788_v17 = vmax.f32 %v755_v11, %v774_v15  ;;  %v785_v18 = vmax.f32 %v752_v12, %v765_v16 }
 0x181   : > { %v798_v19 = vsub.f32 %v2187_v10, %v2190_v14  ;;  %1143 = vst.msk [vmem:[#allocation2 + $0x30] sm:$0xff] %vm936_vm11, %v2190_v14  ;;  %848 = vperm.xlu1 %1692, %v2190_v14   ;;  %v892_v10 = vld [vmem:[#allocation3 + $0x20] sm:$0xff] }
 0x182   : > { %1141 = vst.msk [vmem:[#allocation2 + $0x20] sm:$0xff] %vm936_vm11, %v788_v17  ;;  %838 = vperm.xlu2 %1690, %v788_v17   ;;  %v796_v30 = vsub.f32 %v755_v11, %v788_v17  ;;  %v793_v39 = vsub.f32 %v752_v12, %v785_v18 }
 0x183   : > { %1138 = vst.msk [vmem:[#allocation2 + $0x8] sm:$0xff] %vm936_vm11, %v785_v18 }
 0x184   : > { %v808_v34 = vmul.f32 1.442695, %v796_v30  ;;  %v2215_v36 = vpop.eup %1693  ;;  %v802_v42 = vmul.f32 1.442695, %v793_v39 }
 0x185   : > { %v2223_v43 = vpop.eup %1695 }
 0x186   : > { %v771_v23 = vpop.xlane.xlu1 %770  ;;  %1697 = vpow2.f32 %v808_v34 }
 0x187   : > { %v787_v25 = vmax.f32 %v754_v21, %v771_v23  ;;  %v777_v26 = vpop.xlane.xlu0 %776 }
 0x188   : > { %v2202_v27 = vmax.f32 %v2199_v22, %v777_v26 }
 0x189   : > { %1140 = vst.msk [vmem:[#allocation2 + $0x18] sm:$0xff] %vm936_vm11, %v787_v25  ;;  %823 = vperm.xlu1 %1692, %v785_v18   ;;  %v795_v38 = vsub.f32 %v754_v21, %v787_v25 }
 0x18a   : > { %v797_v29 = vsub.f32 %v2199_v22, %v2202_v27  ;;  %1142 = vst.msk [vmem:[#allocation2 + $0x28] sm:$0xff] %vm936_vm11, %v2202_v27  ;;  %843 = vperm.xlu0 %1691, %v2202_v27   ;;  %818 = vperm.xlu2 %1690, %v784_v9  }
 0x18b   : > { %v806_v41 = vmul.f32 1.442695, %v795_v38 }
 0x18c   : > { %v2225_v46 = vpop.eup %1697  ;;  %v810_v48 = vmul.f32 1.442695, %v797_v29 }
 0x18d   : > { %1699 = vpow2.f32 %v806_v41 }
 0x18e   : > { %v783_v33 = vpop.xlane.xlu1 %782  ;;  %1701 = vpow2.f32 %v802_v42 }
 0x18f   : > { %v2213_v35 = vmax.f32 %v2210_v31, %v783_v33 }
 0x191   : > { %v799_v37 = vsub.f32 %v2210_v31, %v2213_v35  ;;  %1144 = vst.msk [vmem:[#allocation2 + $0x38] sm:$0xff] %vm936_vm11, %v2213_v35  ;;  %833 = vperm.xlu1 %1692, %v787_v25  }
 0x192   : > { %1085 = vperm.xlu0 %1691, %v2215_v36   ;;  %853 = vperm.xlu2 %1690, %v2213_v35  }
 0x193   : > { %v2229_v47 = vpop.eup %1699 }
 0x194   : > { %v2231_v49 = vpop.eup %1701 }
 0x199   : > { %1075 = vperm.xlu1 %1692, %v2223_v43  }
 0x19a   : > { %1095 = vperm.xlu0 %1691, %v2225_v46   ;;  %828 = vperm.xlu2 %1690, %v786_v8  }
 0x1a1   : > { %1090 = vperm.xlu1 %1692, %v2229_v47  }
 0x1a2   : > { %1080 = vperm.xlu2 %1690, %v2231_v49  }
 0x1dc   : > { %v839_v50 = vpop.permute.xlu2 %838 }
 0x1dd   : > { %v860_v57 = vsub.f32 %v2151_v51, %v839_v50 }
 0x1df   : > { %v872_v0 = vmul.f32 1.442695, %v860_v57 }
 0x1e4   : > { %v819_v56 = vpop.permute.xlu2 %818 }
 0x1e5   : > { %v856_v58 = vsub.f32 %v2134_v44, %v819_v56 }
 0x1e7   : > { %v864_v60 = vmul.f32 1.442695, %v856_v58 }
 0x1e9   : > { %1703 = vpow2.f32 %v864_v60 }
 0x1ea   : > { %1705 = vpow2.f32 %v872_v0 }
 0x1ec   : > { %v854_v2 = vpop.permute.xlu2 %853 }
 0x1ed   : > { %v863_v3 = vsub.f32 %v2181_v1, %v854_v2 }
 0x1ef   : > { %v1704_v4 = vpop.eup %1703  ;;  %v878_v5 = vmul.f32 1.442695, %v863_v3  ;;  %v814_v3 = vmul.f32 1.442695, %v799_v37 }
 0x1f0   : > { %v880_v6 = vsel %vm2128_vm7, 0.0, %v1704_v4  ;;  %v1706_v44 = vpop.eup %1705 }
 0x1f1   : > { %v904_v51 = vsel %vm759_vm8, %v880_v6, 0.0  ;;  %1707 = vpow2.f32 %v878_v5  ;;  %v884_v1 = vsel %vm2128_vm7, 0.0, %v1706_v44  ;;  %v945_v53 = vpack.c.bf16 %v880_v6, %v880_v6 }
 0x1f2   : > { %905 = vadd.xlane.f32.xlu0 %v904_v51  ;;  %v916_v16 = vsel %vm759_vm8, %v884_v1, 0.0  ;;  %v949_v56 = vpack.c.bf16 %v884_v1, %v884_v1  ;;  %v812_v1 = vmul.f32 1.442695, %v798_v19  ;;  %v900_v19 = vmul.f32 %v2225_v46, %v892_v10  ;;  %v889_v46 = vld [vmem:[#allocation3 + $0x8] sm:$0xff] }
 0x1f3   : > { %v849_v7 = vpop.permute.xlu1 %848  ;;  %v955_v0 = vunpack.c.l.b16 %v945_v53 }
 0x1f4   : > { %v862_v8 = vsub.f32 %v2155_v52, %v849_v7  ;;  %v829_v9 = vpop.permute.xlu2 %828  ;;  %v1011_v4 = vunpack.c.l.b16 %v949_v56 }
 0x1f5   : > { %v858_v11 = vsub.f32 %v2138_v45, %v829_v9 }
 0x1f6   : > { %v876_v12 = vmul.f32 1.442695, %v862_v8 }
 0x1f7   : > { %v868_v13 = vmul.f32 1.442695, %v858_v11  ;;  %v1708_v15 = vpop.eup %1707 }
 0x1f8   : > { %1709 = vpow2.f32 %v876_v12  ;;  %v887_v18 = vsel %vm2145_vm10, 0.0, %v1708_v15 }
 0x1f9   : > { %1711 = vpow2.f32 %v868_v13  ;;  %v952_v24 = vpack.c.bf16 %v887_v18, %v887_v18 }
 0x1fa   : > { %917 = vadd.xlane.f32.xlu0 %v916_v16 }
 0x1fb   : > { %v824_v17 = vpop.permute.xlu1 %823  ;;  %v1040_v38 = vunpack.c.l.b16 %v952_v24  ;;  %v895_v24 = vld [vmem:[#allocation3 + $0x38] sm:$0xff] }
 0x1fc   : > { %v857_v52 = vsub.f32 %v2159_v54, %v824_v17  ;;  %v844_v20 = vpop.permute.xlu0 %843  ;;  %v925_v54 = vsel %vm759_vm8, %v887_v18, 0.0  ;;  %v888_v18 = vld [vmem:[#allocation3] sm:$0xff]  ;;  %v1081_v14 = vpop.permute.xlu2 %1080 }
 0x1fd   : > { %v861_v45 = vsub.f32 %v2173_v61, %v844_v20  ;;  %v896_v20 = vmul.f32 %v2223_v43, %v888_v18 }
 0x1fe   : > { %v1710_v21 = vpop.eup %1709  ;;  %v866_v23 = vmul.f32 1.442695, %v857_v52 }
 0x1ff   : > { %v1712_v25 = vpop.eup %1711  ;;  %v874_v26 = vmul.f32 1.442695, %v861_v45  ;;  %v886_v28 = vsel %vm2128_vm7, 0.0, %v1710_v21 }
 0x200   : > { %1713 = vpow2.f32 %v866_v23  ;;  %v922_v30 = vsel %vm759_vm8, %v886_v28, 0.0  ;;  %v951_v32 = vpack.c.bf16 %v886_v28, %v886_v28  ;;  %v882_v33 = vsel %vm2128_vm7, 0.0, %v1712_v25  ;;  %v894_v23 = vld [vmem:[#allocation3 + $0x30] sm:$0xff] }
 0x201   : > { %1715 = vpow2.f32 %v874_v26  ;;  %923 = vadd.xlane.f32.xlu2 %v922_v30  ;;  %v910_v61 = vsel %vm759_vm8, %v882_v33, 0.0  ;;  %v947_v7 = vpack.c.bf16 %v882_v33, %v882_v33  ;;  %v890_v25 = vld [vmem:[#allocation3 + $0x10] sm:$0xff] }
 0x202   : > { %v1039_v34 = vunpack.c.l.b16 %v951_v32  ;;  %926 = vadd.xlane.f32.xlu0 %v925_v54  ;;  %911 = vadd.xlane.f32.xlu1 %v910_v61  ;;  %v898_v30 = vmul.f32 %v2215_v36, %v890_v25 }
 0x203   : > { %v834_v39 = vpop.permute.xlu1 %833  ;;  %v983_v31 = vunpack.c.l.b16 %v947_v7 }
 0x204   : > { %v859_v41 = vsub.f32 %v2169_v59, %v834_v39  ;;  %v1041_v42 = vpack.c.b16 %v1040_v38, %v1039_v34  ;;  %v1086_v16 = vpop.permute.xlu0 %1085  ;;  %v893_v38 = vld [vmem:[#allocation3 + $0x28] sm:$0xff]  ;;  %v897_v39 = vmul.f32 %v2231_v49, %v889_v46 }
 0x206   : > { %v1714_v50 = vpop.eup %1713  ;;  %v870_v55 = vmul.f32 1.442695, %v859_v41  ;;  %1541 = vmatmul.msk.bf16.vlgmr.msrb.gmra.mxu3 %vm759_vm8, %v1041_v42 }
 0x207   : > { %v1716_v40 = vpop.eup %1715  ;;  %v881_v57 = vsel %vm2145_vm10, 0.0, %v1714_v50 }
 0x208   : > { %1717 = vpow2.f32 %v870_v55  ;;  %v907_v58 = vsel %vm759_vm8, %v881_v57, 0.0  ;;  %v946_v60 = vpack.c.bf16 %v881_v57, %v881_v57  ;;  %v885_v62 = vsel %vm2145_vm10, 0.0, %v1716_v40  ;;  %v891_v55 = vld [vmem:[#allocation3 + $0x18] sm:$0xff] }
 0x209   : > { %908 = vadd.xlane.f32.xlu2 %v907_v58  ;;  %v919_v59 = vsel %vm759_vm8, %v885_v62, 0.0  ;;  %v950_v63 = vpack.c.bf16 %v885_v62, %v885_v62  ;;  %1719 = vpow2.f32 %v814_v3  ;;  %v899_v40 = vmul.f32 %v2229_v47, %v891_v55  ;;  %v1065_v58 = vld [vmem:[#allocation4] sm:$0xff]  ;;  %v1066_v3 = vld [vmem:[#allocation4 + $0x8] sm:$0xff] }
 0x20a   : > { %v956_v2 = vunpack.c.l.b16 %v946_v60  ;;  %920 = vadd.xlane.f32.xlu1 %v919_v59  ;;  %1721 = vpow2.f32 %v812_v1  ;;  %v1114_v47 = vmul.f32 %v1081_v14, %v1066_v3 }
 0x20b   : > { %v1012_v5 = vunpack.c.l.b16 %v950_v63  ;;  %1723 = vpow2.f32 %v810_v48  ;;  %v1076_v52 = vpop.permute.xlu1 %1075  ;;  %v1072_v63 = vld [vmem:[#allocation4 + $0x38] sm:$0xff]  ;;  %v1070_v48 = vld [vmem:[#allocation4 + $0x28] sm:$0xff] }
 0x20c   : > { %v957_v6 = vpack.c.b16 %v956_v2, %v955_v0  ;;  %v1096_v17 = vpop.permute.xlu0 %1095  ;;  %v1113_v62 = vmul.f32 %v1076_v52, %v1065_v58  ;;  %v1069_v2 = vld [vmem:[#allocation4 + $0x20] sm:$0xff] }
 0x20d   : > { %v1013_v51 = vpack.c.b16 %v1012_v5, %v1011_v4  ;;  %v1067_v4 = vld [vmem:[#allocation4 + $0x10] sm:$0xff] }
 0x20e   : > { %v1718_v44 = vpop.eup %1717  ;;  %1526 = vmatmul.msk.bf16.vlgmr.msrb.gmra.mxu0 %vm759_vm8, %v957_v6  ;;  %v1117_v6 = vmul.f32 %v1096_v17, %v1069_v2  ;;  %v1068_v17 = vld [vmem:[#allocation4 + $0x18] sm:$0xff] }
 0x20f   : > { %1536 = vmatmul.msk.bf16.vlgmr.msrb.gmra.mxu2 %vm759_vm8, %v1013_v51  ;;  %v883_v8 = vsel %vm2145_vm10, 0.0, %v1718_v44  ;;  %v1720_v12 = vpop.eup %1719  ;;  %v1115_v44 = vmul.f32 %v1086_v16, %v1067_v4 }
 0x210   : > { %v913_v9 = vsel %vm759_vm8, %v883_v8, 0.0  ;;  %v948_v11 = vpack.c.bf16 %v883_v8, %v883_v8  ;;  %v1722_v13 = vpop.eup %1721  ;;  %v903_v43 = vmul.f32 %v1720_v12, %v895_v24 }
 0x211   : > { %914 = vadd.xlane.f32.xlu2 %v913_v9  ;;  %v1724_v15 = vpop.eup %1723  ;;  %v902_v26 = vmul.f32 %v1722_v13, %v894_v23 }
 0x212   : > { %v984_v35 = vunpack.c.l.b16 %v948_v11  ;;  %v901_v42 = vmul.f32 %v1724_v15, %v893_v38 }
 0x213   : > { %v2287_v22 = vpop.permute.xlu1 %1090 }
 0x214   : > { %v985_v37 = vpack.c.b16 %v984_v35, %v983_v31  ;;  %v1071_v35 = vld [vmem:[#allocation4 + $0x30] sm:$0xff]  ;;  %v1116_v52 = vmul.f32 %v2287_v22, %v1068_v17 }
 0x216   : > { %1531 = vmatmul.msk.bf16.vlgmr.msrb.gmra.mxu1 %vm759_vm8, %v985_v37  ;;  %1110 = vperm.xlu0 %1691, %v1720_v12  }
 0x223   : > { %1105 = vperm.xlu1 %1692, %v1722_v13  }
 0x229   : > { %1100 = vperm.xlu2 %1690, %v1724_v15  }
 0x265   : > { %v906_v45 = vpop.xlane.xlu0 %905 }
 0x266   : > { %v928_v21 = vadd.f32 %v906_v45, %v896_v20 }
 0x268   : > { %937 = vst.msk [vmem:[#allocation3] sm:$0xff] %vm936_vm11, %v928_v21 }
 0x26d   : > { %v918_v27 = vpop.xlane.xlu0 %917 }
 0x26e   : > { %v932_v29 = vadd.f32 %v918_v27, %v900_v19 }
 0x270   : > { %941 = vst.msk [vmem:[#allocation3 + $0x20] sm:$0xff] %vm936_vm11, %v932_v29 }
 0x274   : > { %v924_v28 = vpop.xlane.xlu2 %923 }
 0x275   : > { %v934_v32 = vadd.f32 %v924_v28, %v902_v26  ;;  %v927_v33 = vpop.xlane.xlu0 %926  ;;  %v912_v54 = vpop.xlane.xlu1 %911 }
 0x276   : > { %v935_v61 = vadd.f32 %v927_v33, %v903_v43  ;;  %v930_v34 = vadd.f32 %v912_v54, %v898_v30 }
 0x277   : > { %943 = vst.msk [vmem:[#allocation3 + $0x30] sm:$0xff] %vm936_vm11, %v934_v32 }
 0x278   : > { %944 = vst.msk [vmem:[#allocation3 + $0x38] sm:$0xff] %vm936_vm11, %v935_v61 }
 0x279   : > { %939 = vst.msk [vmem:[#allocation3 + $0x10] sm:$0xff] %vm936_vm11, %v930_v34 }
 0x27c   : > { %v909_v41 = vpop.xlane.xlu2 %908 }
 0x27d   : > { %v929_v50 = vadd.f32 %v909_v41, %v897_v39  ;;  %v921_v53 = vpop.xlane.xlu1 %920 }
 0x27e   : > { %v933_v36 = vadd.f32 %v921_v53, %v901_v42 }
 0x27f   : > { %938 = vst.msk [vmem:[#allocation3 + $0x8] sm:$0xff] %vm936_vm11, %v929_v50 }
 0x280   : > { %942 = vst.msk [vmem:[#allocation3 + $0x28] sm:$0xff] %vm936_vm11, %v933_v36 }
 0x284   : > { %v915_v56 = vpop.xlane.xlu2 %914 }
 0x285   : > { %v931_v57 = vadd.f32 %v915_v56, %v899_v40 }
 0x287   : > { %940 = vst.msk [vmem:[#allocation3 + $0x18] sm:$0xff] %vm936_vm11, %v931_v57 }
 0x288   : > { %v1111_v0 = vpop.permute.xlu0 %1110 }
 0x289   : > { %v1060_v60 = vpop.f32.mrf.mxu3  ;;  %v1120_v5 = vmul.f32 %v1111_v0, %v1072_v63 }
 0x28b   : > { %v976_v49 = vpop.f32.mrf.mxu0 }
 0x28c   : > { %v1121_v59 = vadd.f32 %v1113_v62, %v976_v49  ;;  %v1101_v13 = vpop.permute.xlu2 %1100 }
 0x28d   : > { %v1118_v18 = vmul.f32 %v1101_v13, %v1070_v48 }
 0x28e   : > { %1129 = vst.msk [vmem:[#allocation4] sm:$0xff] %vm603_vm2, %v1121_v59 }
 0x291   : > { %v1062_v51 = vpop.f32.mrf.mxu3 }
 0x292   : > { %v1128_v7 = vadd.f32 %v1120_v5, %v1062_v51  ;;  %v1032_v8 = vpop.f32.mrf.mxu2 }
 0x293   : > { %v978_v9 = vpop.f32.mrf.mxu0  ;;  %v1004_v11 = vpop.f32.mrf.mxu1  ;;  %v1125_v31 = vadd.f32 %v1117_v6, %v1032_v8 }
 0x294   : > { %1136 = vst.msk [vmem:[#allocation4 + $0x38] sm:$0xff] %vm603_vm2, %v1128_v7  ;;  %v1122_v37 = vadd.f32 %v1114_v47, %v978_v9  ;;  %v1123_v12 = vadd.f32 %v1115_v44, %v1004_v11 }
 0x295   : > { %1133 = vst.msk [vmem:[#allocation4 + $0x20] sm:$0xff] %vm603_vm2, %v1125_v31  ;;  %v1106_v1 = vpop.permute.xlu1 %1105 }
 0x296   : > { %1130 = vst.msk [vmem:[#allocation4 + $0x8] sm:$0xff] %vm603_vm2, %v1122_v37  ;;  %v1119_v15 = vmul.f32 %v1106_v1, %v1071_v35 }
 0x297   : > { %1131 = vst.msk [vmem:[#allocation4 + $0x10] sm:$0xff] %vm603_vm2, %v1123_v12 }
 0x298   : > { %v1127_v16 = vadd.f32 %v1119_v15, %v1060_v60 }
 0x29a   : > { %1135 = vst.msk [vmem:[#allocation4 + $0x30] sm:$0xff] %vm603_vm2, %v1127_v16  ;;  %v1034_v20 = vpop.f32.mrf.mxu2 }
 0x29b   : > { %v1006_v45 = vpop.f32.mrf.mxu1  ;;  %v1126_v21 = vadd.f32 %v1118_v18, %v1034_v20 }
 0x29c   : > { %v1124_v10 = vadd.f32 %v1116_v52, %v1006_v45 }
 0x29d   : > { %1134 = vst.msk [vmem:[#allocation4 + $0x28] sm:$0xff] %vm603_vm2, %v1126_v21 }
 0x29e   : > { %1132 = vst.msk [vmem:[#allocation4 + $0x18] sm:$0xff] %vm603_vm2, %v1124_v10 }
 0x29f PF: > { %p1542_p2 = scmp.ne.s32.totalorder %s1861_s17, 2 }
 0x2a0   : > { %s1891_s17 = smov (!%p1542_p2), 96   ;;  %s1892_s29 = smov (!%p1542_p2), 64  }
 0x2a1   : > { %1148 = sbr.rel (%p1542_p2) target bundleno = 937 (0x3a9), region = 167  ;;  %s1893_s8 = smov (!%p1542_p2), 32  }
 0x2a6   : > { %v1153_v14 = vld [vmem:[#allocation3 + $0x20] sm:$0xff]  ;;  %v1151_v19 = vld [vmem:[#allocation3 + $0x10] sm:$0xff]  ;;  %v1154_v27 = vld [vmem:[#allocation3 + $0x28] sm:$0xff]  ;;  %v1890_v29 = vmov 0   ;;  %vm1261_vm4 = vcmask 261120   ;;  %vm1264_vm5 = vcmask 523264  }
 0x2a7   : > { %1726 = vset.pattern.permute.xlu1 %v1890_v29  ;;  %1725 = vset.pattern.permute.xlu0 %v1890_v29  ;;  %vm1161_vm12 = vcmp.eq.f32.partialorder %v1153_v14, 0.0  ;;  %vm1159_vm13 = vcmp.eq.f32.partialorder %v1151_v19, 0.0  ;;  %v1152_v22 = vld [vmem:[#allocation3 + $0x18] sm:$0xff]  ;;  %v1155_v23 = vld [vmem:[#allocation3 + $0x30] sm:$0xff]  ;;  %vm1162_vm14 = vcmp.eq.f32.partialorder %v1154_v27, 0.0  ;;  %v1150_v32 = vld [vmem:[#allocation3 + $0x8] sm:$0xff] }
 0x2a8   : > { %v1169_v24 = vsel %vm1161_vm12, 1.0, %v1153_v14  ;;  %v1167_v25 = vsel %vm1159_vm13, 1.0, %v1151_v19  ;;  %1727 = vset.pattern.permute.xlu2 %v1890_v29  ;;  %vm1163_vm15 = vcmp.eq.f32.partialorder %v1155_v23, 0.0  ;;  %vm1160_vm0 = vcmp.eq.f32.partialorder %v1152_v22, 0.0  ;;  %v1156_v28 = vld [vmem:[#allocation3 + $0x38] sm:$0xff]  ;;  %v1149_v54 = vld [vmem:[#allocation3] sm:$0xff] }
 0x2a9   : > { %1743 = vrcp.f32 %v1169_v24  ;;  %v1171_v26 = vsel %vm1163_vm15, 1.0, %v1155_v23  ;;  %v1170_v43 = vsel %vm1162_vm14, 1.0, %v1154_v27  ;;  %v1168_v30 = vsel %vm1160_vm0, 1.0, %v1152_v22  ;;  %v1187_v40 = vld [vmem:[#allocation4 + $0x30] sm:$0xff]  ;;  %v1188_v56 = vld [vmem:[#allocation4 + $0x38] sm:$0xff]  ;;  %v1185_v0 = vld [vmem:[#allocation4 + $0x20] sm:$0xff] }
 0x2aa   : > { %1745 = vrcp.f32 %v1167_v25  ;;  %vm1164_vm1 = vcmp.eq.f32.partialorder %v1156_v28, 0.0  ;;  %vm1158_vm2 = vcmp.eq.f32.partialorder %v1150_v32, 0.0  ;;  %vm1157_vm3 = vcmp.eq.f32.partialorder %v1149_v54, 0.0  ;;  %v1183_v63 = vld [vmem:[#allocation4 + $0x10] sm:$0xff]  ;;  %v1186_v2 = vld [vmem:[#allocation4 + $0x28] sm:$0xff]  ;;  %v1184_v3 = vld [vmem:[#allocation4 + $0x18] sm:$0xff] }
 0x2ab   : > { %1747 = vrcp.f32 %v1171_v26  ;;  %v1172_v34 = vsel %vm1164_vm1, 1.0, %v1156_v28  ;;  %v1166_v38 = vsel %vm1158_vm2, 1.0, %v1150_v32  ;;  %v1165_v41 = vsel %vm1157_vm3, 1.0, %v1149_v54  ;;  %v1182_v35 = vld [vmem:[#allocation4 + $0x8] sm:$0xff]  ;;  %v1181_v37 = vld [vmem:[#allocation4] sm:$0xff] }
 0x2ac   : > { %1749 = vrcp.f32 %v1170_v43  ;;  %vm1267_vm6 = vcmask 785408  }
 0x2ad   : > { %1751 = vrcp.f32 %v1168_v30 }
 0x2ae   : > { %1753 = vrcp.f32 %v1172_v34 }
 0x2af   : > { %v1744_v33 = vpop.eup %1743  ;;  %1755 = vrcp.f32 %v1166_v38 }
 0x2b0   : > { %v1746_v61 = vpop.eup %1745  ;;  %1211 = vperm.xlu1 %1726, %v1744_v33   ;;  %1757 = vrcp.f32 %v1165_v41 }
 0x2b1   : > { %1201 = vperm.xlu0 %1725, %v1746_v61   ;;  %v1748_v46 = vpop.eup %1747 }
 0x2b2   : > { %v1750_v39 = vpop.eup %1749  ;;  %1221 = vperm.xlu2 %1727, %v1748_v46  }
 0x2b3   : > { %v1752_v42 = vpop.eup %1751 }
 0x2b4   : > { %v1754_v50 = vpop.eup %1753 }
 0x2b5   : > { %v1756_v53 = vpop.eup %1755 }
 0x2b6   : > { %v1758_v36 = vpop.eup %1757 }
 0x2b8   : > { %1216 = vperm.xlu1 %1726, %v1750_v39  }
 0x2b9   : > { %1206 = vperm.xlu0 %1725, %v1752_v42  }
 0x2ba   : > { %1226 = vperm.xlu2 %1727, %v1754_v50  }
 0x2c0   : > { %1196 = vperm.xlu1 %1726, %v1756_v53  }
 0x2c1   : > { %1191 = vperm.xlu0 %1725, %v1758_v36  }
 0x30c   : > { %v1222_v55 = vpop.permute.xlu2 %1221 }
 0x30d   : > { %v1235_v57 = vmul.f32 %v1222_v55, %v1187_v40 }
 0x314   : > { %v1227_v58 = vpop.permute.xlu2 %1226 }
 0x315   : > { %v1236_v60 = vmul.f32 %v1227_v58, %v1188_v56 }
 0x317   : > { %v1738_v62 = vpack.i.bf16 %v1236_v60, %v1235_v57 }
 0x319   : > { %1739 = vrot.lane.b32.xlu1 %v1738_v62, %s1891_s17 }
 0x322   : > { %v1212_v49 = vpop.permute.xlu1 %1211 }
 0x323   : > { %v1202_v59 = vpop.permute.xlu0 %1201  ;;  %v1233_v6 = vmul.f32 %v1212_v49, %v1185_v0 }
 0x324   : > { %v1231_v4 = vmul.f32 %v1202_v59, %v1183_v63 }
 0x32a   : > { %v1217_v5 = vpop.permute.xlu1 %1216 }
 0x32b   : > { %v1234_v51 = vmul.f32 %v1217_v5, %v1186_v2  ;;  %v1207_v47 = vpop.permute.xlu0 %1206 }
 0x32c   : > { %v1232_v44 = vmul.f32 %v1207_v47, %v1184_v3 }
 0x32d   : > { %v1733_v7 = vpack.i.bf16 %v1234_v51, %v1233_v6 }
 0x32e   : > { %v1728_v8 = vpack.i.bf16 %v1232_v44, %v1231_v4 }
 0x32f   : > { %1734 = vrot.lane.b32.xlu0 %v1733_v7, %s1892_s29 }
 0x330   : > { %1729 = vrot.lane.b32.xlu2 %v1728_v8, %s1893_s8 }
 0x332   : > { %v1197_v9 = vpop.permute.xlu1 %1196 }
 0x333   : > { %v1192_v11 = vpop.permute.xlu0 %1191  ;;  %v1230_v13 = vmul.f32 %v1197_v9, %v1182_v35 }
 0x334   : > { %v1229_v15 = vmul.f32 %v1192_v11, %v1181_v37 }
 0x38a   : > { %v1730_v31 = vpop.permute.xlu2 %1729 }
 0x38b   : > { %v1732_v12 = vunpack.i.h.bf16 %v1730_v31  ;;  %v1731_v1 = vunpack.i.l.bf16 %v1730_v31  ;;  %v1740_v48 = vpop.permute.xlu1 %1739 }
 0x38c   : > { %v1742_v45 = vunpack.i.h.bf16 %v1740_v48  ;;  %v1741_v21 = vunpack.i.l.bf16 %v1740_v48 }
 0x38d   : > { %v1262_v52 = vsel %vm1261_vm4, %v1229_v15, %v1731_v1  ;;  %v1263_v20 = vsel %vm1261_vm4, %v1230_v13, %v1732_v12 }
 0x3a1   : > { %v1735_v17 = vpop.permute.xlu0 %1734 }
 0x3a2   : > { %v1737_v16 = vunpack.i.h.bf16 %v1735_v17  ;;  %v1736_v18 = vunpack.i.l.bf16 %v1735_v17 }
 0x3a4   : > { %v1266_v10 = vsel %vm1264_vm5, %v1263_v20, %v1737_v16  ;;  %v1265_v14 = vsel %vm1264_vm5, %v1262_v52, %v1736_v18 }
 0x3a5   : > { %v1269_v19 = vsel %vm1267_vm6, %v1266_v10, %v1742_v45  ;;  %v1268_v27 = vsel %vm1267_vm6, %v1265_v14, %v1741_v21 }
 0x3a6   : > { %v1576_v29 = vpack.c.bf16 %v1269_v19, %v1268_v27 }
 0x3a8   : > { %1577 = vst [vmem:[%s2084_s25] sm:$0xff] %v1576_v29  }
 0x3a9 PF: > { %s1544_s9 = sshll.u32 %s1865_s18, 1  ;;  %s1545_s4 = sshll.u32 %s1869_s19, 3 }
 0x3aa   : > { %s1289_s24 = sshll.u32 %s2084_s25, 4  ;;  %s1286_s26 = sadd.s32 %s1545_s4, %s1544_s9  ;;  %s1290_s24 = int_to_ptr.vmem [resolvable:$true] %s1289_s24 }
 0x3ab   : > { %s1546_s11 = sshll.u32 %s1286_s26, 2  ;;  %s1275_s7 = scalar_lea.sflag [#allocation9], %s2073_s30 }
 0x3ac   : > { %s1288_s20 = scalar_lea.hbm %s2370_s3, %s1546_s11  ;;  %s1779_s25 = scalar_lea.hbm %s2370_s3, 64 }
 0x3ad   : > { %s1291_s10 = sshll.u32 %s1288_s20, 4  ;;  %s1292_s10 = int_to_ptr.hbm [resolvable:$true] %s1291_s10 }
 0x3ae   : > { %s1773_s17 = sshra.s32 %s1292_s10, 4  ;;  %s1774_s17 = int_to_ptr.hbm [resolvable:$true] %s1773_s17 }
 0x3af   : > { %s1775_s29 = scalar_lea.hbm %s1774_s17, 8  ;;  %p1780_p8 = scmp.lt.s32.totalorder %s1774_s17, %s2370_s3 }
 0x3b0   : > { %p1776_p7 = scmp.ne.s32.totalorder %s1774_s17, %s1775_s29  ;;  %p1781_p9 = scmp.lt.s32.totalorder %s1779_s25, %s1775_s29 }
 0x3b2   : > { %p1777_p1 = pnand %p1776_p7, %p2028_p0  ;;  %p1782_p10 = por %p1781_p9, %p1780_p8 }
 0x3b4   : > { %p1778_p4 = pneg %p1777_p1 }
 0x3b6   : > { %p1783_p11 = pnand %p1782_p10, %p1778_p4 }
 0x3b8   : > { %1786 = shalt.err (!%p1783_p11)
}
 0x3b9   : > { %s1894_s30 = smov 64   ;;  %s1895_s4 = smov 4  }
 0x3ba   : > { %1578 = dma.vmem_to_hbm [thread:$0]  (%p2028_p0), %s1290_s24, 128, %s1292_s10, %s1275_s7, %s1894_s30, %s1894_s30, %s1895_s4  }
 0x3bb PF: > { %p1584_p12 = scmp.ge.s32.totalorder %s1885_s23, 2  ;;  %s1306_s26 = sand.u32 1, %s1841_s12  }
 0x3bc   : > { %s1307_s11 = scalar_lea.sflag [#allocation9], %s1306_s26 }
 0x3bd   : > { %p1581_p13 = pnand %p1584_p12, %p2038_p6 }
 0x3bf   : > { %p1582_p3 = pneg %p1581_p13 }
 0x3c1   : > { %1836 = dma.done.wait (%p1582_p3), %s1307_s11, 128  }
 0x3c2   : > { %1838 = vsyncadd (%p1582_p3), %s1307_s11, 4294967168  ;;  %s16_s23 = sadd.s32 1, %s1885_s23   ;;  %s2388_s5 = sld [smem:[#allocation15_spill]] }
 0x3c3   : > { %p13_p5 = scmp.ge.s32.totalorder %s16_s23, 26   ;;  %s2389_s17 = sld [smem:[#allocation11_spill]] }
 0x3c4   : > { %s2390_s20 = sld [smem:[#allocation12_spill]]  ;;  %s2393_s12 = smov %s1853_s15 }
 0x3c5   : > { %s2391_s24 = sld [smem:[#allocation13_spill]]  ;;  %s2394_s13 = smov %s1849_s14 }
 0x3c6   : > { %s2392_s6 = sld [smem:[#allocation14_spill]]  ;;  %s2395_s14 = smov %s2043_s27 }
 0x3c7   : > { %s2396_s15 = smov %s1857_s16  ;;  %s2398_s18 = smov %s1877_s21 }
 0x3c8   : > { %s2397_s16 = smov %s2388_s5  ;;  %s2399_s19 = smov %s1881_s22 }
 0x3c9   :  { %15 = sbr.rel (!%p13_p5) target bundleno = 7 (0x7), region = 223 }
 0x3cb   : > { %s2400_s21 = smov %s2391_s24 }
 0x3cc   : > { %s2401_s22 = smov %s2392_s6 }
 0x3ce   :  { %1313 = vsyncpa [#allocation9], 1 }
 0x3cf   :  { %1315 = vsyncpa [#allocation9 + $0x1], 1 }

</bundles_post_ra>
